<compile_context>
chip_gen: v6e
topology: v6e:2x2x1
jax: 0.10.0
libtpu: 0.0.40
codegen_flags: <defaults>
</compile_context>

<pallas_src>
import math

import jax
import jax.numpy as jnp
from jax import lax
from jax.experimental import pallas as pl
from jax.experimental.pallas import tpu as pltpu


# ----------------------------------------------------------------------------
# Tile-size budgets (bytes).  Chosen so worst-case resident VMEM stays well
# under v7x's 64 MiB physical (and under the 48 MiB scoped limit we request).
# ----------------------------------------------------------------------------
_CONV_PLANES_BUDGET = 8 * 1024 * 1024   # single-copy budget for the 4-plane channel slab
_CONV_W_BUDGET = 8 * 1024 * 1024        # single-copy budget for the weight block
_CONV_ACC_BUDGET = 4 * 1024 * 1024      # f32 accumulator budget -> caps t_cout
_POOL_BUDGET = 4 * 1024 * 1024          # input channel-tile budget for the pool
_VMEM_LIMIT_BYTES = 48 * 1024 * 1024    # > 16/32 MiB scoped defaults, < v7x 64 MiB physical


def _round_up(x, m):
    return (x + m - 1) // m * m


# ----------------------------------------------------------------------------
# Kernels
# ----------------------------------------------------------------------------
def _conv3x3s2_kernel(p00_ref, p01_ref, p10_ref, p11_ref, w_ref, b_ref, o_ref, acc_ref):
    """3x3 / stride-2 conv, one (batch, cout-tile) output block, reduced over cin tiles.

    p??_ref : (t_cin, h_out+1, w_out+1) parity planes of the zero-padded input
              (p[a][b] holds padded-input rows a::2, cols b::2).
    w_ref   : (9, t_cout, t_cin)   tap-major weights.
    b_ref   : (t_cout, 1) float32  bias column.
    o_ref   : (t_cout, M)          M = h_out*w_out  (== NCHW layout, flattened spatial).
    acc_ref : (t_cout, M) float32  scratch accumulator, resident across the cin grid axis.
    """
    k = pl.program_id(2)

    @pl.when(k == 0)
    def _init():
        acc_ref[...] = jnp.zeros_like(acc_ref)

    h_out = p00_ref.shape[1] - 1
    w_out = p00_ref.shape[2] - 1
    m = h_out * w_out
    planes = (p00_ref, p01_ref, p10_ref, p11_ref)

    acc = acc_ref[...]
    for dh in range(3):
        for dw in range(3):
            # tap (dh, dw): output pixel (r, c) reads padded input (2r+dh, 2c+dw),
            # i.e. a unit-stride window of parity plane (dh%2, dw%2).
            tap_ref = planes[2 * (dh % 2) + (dw % 2)]
            tap = tap_ref[:, dh // 2:dh // 2 + h_out, dw // 2:dw // 2 + w_out]
            tap = tap.reshape(tap.shape[0], m)                      # (t_cin, M)
            acc = acc + jnp.dot(w_ref[3 * dh + dw], tap,            # (t_cout, t_cin) @ (t_cin, M)
                                preferred_element_type=jnp.float32)
    acc_ref[...] = acc

    @pl.when(k == pl.num_programs(2) - 1)
    def _finalize():
        o_ref[...] = (acc_ref[...] + b_ref[...]).astype(o_ref.dtype)


def _avgpool2x2_kernel(x_ref, pb_ref, o_ref):
    """2x2 / stride-2 average pool for one (batch, channel-tile) block.

    x_ref : (t_c, H, W)        pb_ref : (W, W_out) with 0.25 entries (both 1/2 folded)
    o_ref : (t_c, H_out*W_out) lane-dense output.
    """
    t_c, h, w = x_ref.shape
    w_out = pb_ref.shape[1]
    h_out = h // 2
    # Column pooling for all channels/rows in ONE lane-friendly MXU matmul.
    cols = jnp.dot(x_ref[...].reshape(t_c * h, w), pb_ref[...],
                   preferred_element_type=jnp.float32)              # (t_c*h, w_out)
    cols = cols.reshape(t_c, h_out, 2, w_out)
    pooled = cols[:, :, 0, :] + cols[:, :, 1, :]                    # adjacent-row add (VPU)
    o_ref[...] = pooled.reshape(t_c, h_out * w_out).astype(o_ref.dtype)


# ----------------------------------------------------------------------------
# Wrappers
# ----------------------------------------------------------------------------
def downsample_conv2d(x, weight, bias, padding=1, *, _force_t_cin=None, _force_t_cout=None):
    """3x3 / stride-2 conv (NCHW in/out), matching nn.Conv2d(C, Cout, 3, 2, p)."""
    n, cin, h, w = x.shape
    cout = weight.shape[0]
    ksz, stride = 3, 2
    h_out = (h + 2 * padding - ksz) // stride + 1
    w_out = (w + 2 * padding - ksz) // stride + 1
    assert h_out > 0 and w_out > 0
    m = h_out * w_out
    ho1, wo1 = h_out + 1, w_out + 1
    itemsize = jnp.dtype(x.dtype).itemsize

    # ---- Cout tile (parallel axis): bounds the f32 accumulator / output block.
    cout_p = _round_up(cout, 8)
    t_cout = max(8, min(cout_p, 512, (_CONV_ACC_BUDGET // (4 * m)) // 8 * 8))
    if _force_t_cout is not None:
        t_cout = _force_t_cout                      # must be a multiple of 8

    # ---- Cin tile (reduction axis): bounds the parity-plane slab and weight block.
    plane_c_bytes = 4 * ho1 * wo1 * itemsize        # bytes / input channel over the 4 planes
    cin_p8 = _round_up(cin, 8)
    if _force_t_cin is not None:
        t_cin = _force_t_cin                        # multiple of 128 (or >= cin) required
        cin_p = _round_up(cin, t_cin)
    elif (cin_p8 <= 128
          or (cin_p8 * plane_c_bytes <= _CONV_PLANES_BUDGET
              and 9 * t_cout * cin_p8 * itemsize <= _CONV_W_BUDGET)):
        cin_p, t_cin = cin_p8, cin_p8               # no K tiling (block == full dim)
    else:
        # When tiling, t_cin is the lane dim of the weight block -> multiple of 128.
        t_cin = min(256, max(128, (_CONV_PLANES_BUDGET // plane_c_bytes) // 128 * 128))
        cin_p = _round_up(cin, t_cin)

    n_ct = pl.cdiv(cout_p, t_cout)
    n_kt = cin_p // t_cin

    # ---- Layout glue (pure XLA, ~1x input HBM): zero-pad + split into parity planes.
    hp, wp = 2 * ho1, 2 * wo1
    xp = jnp.pad(x, ((0, 0), (0, cin_p - cin),
                     (padding, hp - h - padding), (padding, wp - w - padding)))
    planes = [xp[:, :, a::2, b::2] for a in (0, 1) for b in (0, 1)]   # each (n, cin_p, ho1, wo1)

    # (Cout, Cin, 3, 3) -> (9, Cout, Cin), tap index = 3*dh + dw; zero-pad channels.
    w9 = jnp.transpose(weight, (2, 3, 0, 1)).reshape(9, cout, cin).astype(x.dtype)
    w9 = jnp.pad(w9, ((0, 0), (0, cout_p - cout), (0, cin_p - cin)))
    b_col = jnp.pad(bias.astype(jnp.float32).reshape(cout, 1), ((0, cout_p - cout), (0, 0)))

    plane_spec = pl.BlockSpec((pl.Squeezed(), t_cin, ho1, wo1), lambda b, j, k: (b, k, 0, 0))

    out = pl.pallas_call(
        _conv3x3s2_kernel,
        out_shape=jax.ShapeDtypeStruct((n, cout_p, m), x.dtype),
        grid=(n, n_ct, n_kt),
        in_specs=[plane_spec, plane_spec, plane_spec, plane_spec,
                  pl.BlockSpec((9, t_cout, t_cin), lambda b, j, k: (0, j, k)),
                  pl.BlockSpec((t_cout, 1), lambda b, j, k: (j, 0))],
        out_specs=pl.BlockSpec((pl.Squeezed(), t_cout, m), lambda b, j, k: (b, j, 0)),
        scratch_shapes=[pltpu.VMEM((t_cout, m), jnp.float32)],
        compiler_params=pltpu.CompilerParams(
            dimension_semantics=("parallel", "parallel", "arbitrary"),
            vmem_limit_bytes=_VMEM_LIMIT_BYTES),
    )(planes[0], planes[1], planes[2], planes[3], w9, b_col)

    # (n, cout_p, h_out*w_out) -> NCHW for free (drop padded output channels).
    return out[:, :cout, :].reshape(n, cout, h_out, w_out)


def downsample_avgpool2d(x, *, _force_t_c=None):
    """2x2 / stride-2 average pool (NCHW), matching nn.AvgPool2d(2, 2)."""
    n, c, h, w = x.shape
    h_out, w_out = h // 2, w // 2
    assert h_out > 0 and w_out > 0
    if h != 2 * h_out or w != 2 * w_out:            # PyTorch floors odd spatial dims
        x = x[:, :, :2 * h_out, :2 * w_out]
        h, w = 2 * h_out, 2 * w_out
    m = h_out * w_out
    itemsize = jnp.dtype(x.dtype).itemsize

    cap = max(8, (_POOL_BUDGET // (h * w * itemsize)) // 8 * 8)
    t_c = c if c <= cap else cap                    # full (any c) or multiple of 8
    if _force_t_c is not None:
        t_c = _force_t_c                            # multiple of 8 (or >= c)
    grid = (n, pl.cdiv(c, t_c))

    # Column-pair pooling matrix with BOTH 1/2 factors folded in (0.25 entries),
    # so the row pooling is a plain add in the kernel.
    pool_b = (0.25 * jnp.repeat(jnp.eye(w_out, dtype=jnp.float32), 2, axis=0)).astype(x.dtype)

    out = pl.pallas_call(
        _avgpool2x2_kernel,
        out_shape=jax.ShapeDtypeStruct((n, c, m), x.dtype),
        grid=grid,
        in_specs=[pl.BlockSpec((pl.Squeezed(), t_c, h, w), lambda b, j: (b, j, 0, 0)),
                  pl.BlockSpec((w, w_out), lambda b, j: (0, 0))],
        out_specs=pl.BlockSpec((pl.Squeezed(), t_c, m), lambda b, j: (b, j, 0)),
        compiler_params=pltpu.CompilerParams(
            dimension_semantics=("parallel", "parallel"),
            vmem_limit_bytes=_VMEM_LIMIT_BYTES),
    )(x, pool_b)
    return out.reshape(n, c, h_out, w_out)


class Downsample:
    """JAX/Pallas port of the PyTorch Downsample module (dims=2 path)."""

    def __init__(self, channels, use_conv, dims=2, out_channels=None, padding=1,
                 *, key=None, dtype=jnp.float32):
        # TODO(synk): dims=1 and dims=3 (stride (1,2,2)) variants are not implemented.
        assert dims == 2, "only the 2-D Downsample path is implemented"
        self.channels = channels
        self.out_channels = out_channels or channels
        self.use_conv = use_conv
        self.dims = dims
        self.padding = padding
        if use_conv:
            assert key is not None
            kw_, kb_ = jax.random.split(key)
            fan_in = channels * 3 * 3
            bound = 1.0 / math.sqrt(fan_in)
            self.weight = jax.random.uniform(
                kw_, (self.out_channels, channels, 3, 3), dtype, -bound, bound)
            self.bias = jax.random.uniform(
                kb_, (self.out_channels,), dtype, -bound, bound)
        else:
            assert self.channels == self.out_channels
            self.weight = None
            self.bias = None

    def __call__(self, x):
        assert x.shape[1] == self.channels
        if self.use_conv:
            return downsample_conv2d(x, self.weight, self.bias, self.padding)
        return downsample_avgpool2d(x)


# ----------------------------------------------------------------------------
# Pure-JAX references
# ----------------------------------------------------------------------------
def downsample_conv2d_ref(x, weight, bias, padding=1):
    out = lax.conv_general_dilated(
        x, weight, window_strides=(2, 2),
        padding=[(padding, padding), (padding, padding)],
        dimension_numbers=("NCHW", "OIHW", "NCHW"),
        precision=lax.Precision.HIGHEST)
    return out + bias[None, :, None, None]


def downsample_avgpool2d_ref(x):
    n, c, h, w = x.shape
    x = x[:, :, :2 * (h // 2), :2 * (w // 2)]
    return x.reshape(n, c, h // 2, 2, w // 2, 2).mean(axis=(3, 5))


# ----------------------------------------------------------------------------
# Demo / self-test
# ----------------------------------------------------------------------------
if __name__ == "__main__":
    key = jax.random.PRNGKey(0)
    kx, kp, kx2, kp2, kx3 = jax.random.split(key, 5)

    # --- use_conv=True path (3x3, stride 2, padding 1) at small shapes ---
    N, C, H, W, COUT = 2, 4, 16, 16, 8
    x = jax.random.normal(kx, (N, C, H, W), dtype=jnp.float32)
    ds_conv = Downsample(C, use_conv=True, dims=2, out_channels=COUT, padding=1, key=kp)
    out_conv = jax.block_until_ready(ds_conv(x))
    ref_conv = downsample_conv2d_ref(x, ds_conv.weight, ds_conv.bias, padding=1)
    assert out_conv.shape == (N, COUT, H // 2, W // 2), out_conv.shape
    err = float(jnp.max(jnp.abs(out_conv - ref_conv)))
    assert err < 2e-3, err

    # --- use_conv=False path (2x2 avg pool, stride 2) ---
    ds_pool = Downsample(C, use_conv=False, dims=2)
    out_pool = jax.block_until_ready(ds_pool(x))
    ref_pool = downsample_avgpool2d_ref(x)
    assert out_pool.shape == (N, C, H // 2, W // 2), out_pool.shape
    err = float(jnp.max(jnp.abs(out_pool - ref_pool)))
    assert err < 1e-3, err

    # --- exercise the tiled paths at still-small shapes:
    #     K-reduction grid axis (2 cin tiles) + ragged Cout tiles for the conv,
    #     ragged channel tiles for the pool.
    x2 = jax.random.normal(kx2, (1, 256, 16, 16), dtype=jnp.float32)
    ds2 = Downsample(256, use_conv=True, dims=2, out_channels=40, padding=1, key=kp2)
    out2 = jax.block_until_ready(
        downsample_conv2d(x2, ds2.weight, ds2.bias, padding=1,
                          _force_t_cin=128, _force_t_cout=16))
    ref2 = downsample_conv2d_ref(x2, ds2.weight, ds2.bias, padding=1)
    err = float(jnp.max(jnp.abs(out2 - ref2)))
    assert err < 1e-2, err

    x3 = jax.random.normal(kx3, (1, 20, 16, 16), dtype=jnp.float32)
    out3 = jax.block_until_ready(downsample_avgpool2d(x3, _force_t_c=8))
    ref3 = downsample_avgpool2d_ref(x3)
    err = float(jnp.max(jnp.abs(out3 - ref3)))
    assert err < 1e-3, err

    print("KERNEL_OK")
</pallas_src>

<mosaic_0001>
module attributes {stable_mosaic.version = 11 : i64} {
  func.func @_conv3x3s2_kernel(%arg0: i32, %arg1: i32, %arg2: i32, %arg3: memref<1x8x9x9xf32, #tpu.memory_space<vmem>>, %arg4: memref<1x8x9x9xf32, #tpu.memory_space<vmem>>, %arg5: memref<1x8x9x9xf32, #tpu.memory_space<vmem>>, %arg6: memref<1x8x9x9xf32, #tpu.memory_space<vmem>>, %arg7: memref<9x8x8xf32, #tpu.memory_space<vmem>>, %arg8: memref<8x1xf32, #tpu.memory_space<vmem>>, %arg9: memref<1x8x64xf32, #tpu.memory_space<vmem>>, %arg10: memref<8x64xf32, #tpu.memory_space<vmem>>) attributes {dimension_semantics = [#tpu.dimension_semantics<parallel>, #tpu.dimension_semantics<parallel>, #tpu.dimension_semantics<arbitrary>], iteration_bounds = array<i64: 2, 1, 1>, scalar_prefetch = 0 : i64, scratch_operands = 1 : i64, tpu.core_type = #tpu.core_type<tc>, window_params = [{transform_indices = @transform_0, window_bounds = array<i64: 1, 8, 9, 9>}, {transform_indices = @transform_1, window_bounds = array<i64: 1, 8, 9, 9>}, {transform_indices = @transform_2, window_bounds = array<i64: 1, 8, 9, 9>}, {transform_indices = @transform_3, window_bounds = array<i64: 1, 8, 9, 9>}, {transform_indices = @transform_4, window_bounds = array<i64: 9, 8, 8>}, {transform_indices = @transform_5, window_bounds = array<i64: 8, 1>}, {transform_indices = @transform_6, window_bounds = array<i64: 1, 8, 64>}]} {
    %c0_i32 = arith.constant 0 : i32
    %0 = arith.cmpi eq, %arg2, %c0_i32 : i32
    %1 = arith.extui %0 : i1 to i32
    %c0_i32_0 = arith.constant 0 : i32
    %2 = arith.cmpi ne, %1, %c0_i32_0 : i32
    scf.if %2 {
      %cst_69 = arith.constant 0.000000e+00 : f32
      %71 = vector.broadcast %cst_69 : f32 to vector<8x64xf32>
      %c0_70 = arith.constant 0 : index
      %c0_71 = arith.constant 0 : index
      %72 = vector.load %arg10[%c0_70, %c0_71] : memref<8x64xf32, #tpu.memory_space<vmem>>, vector<8x64xf32>
      tpu.vector_store %arg10[%c0_70, %c0_71], %71 {strides = array<i32>} : memref<8x64xf32, #tpu.memory_space<vmem>>, vector<8x64xf32>,
    } else {
    }
    %c0 = arith.constant 0 : index
    %c0_1 = arith.constant 0 : index
    %3 = vector.load %arg10[%c0, %c0_1] : memref<8x64xf32, #tpu.memory_space<vmem>>, vector<8x64xf32>
    %c0_2 = arith.constant 0 : index
    %c0_3 = arith.constant 0 : index
    %c0_4 = arith.constant 0 : index
    %c0_5 = arith.constant 0 : index
    %4 = vector.load %arg3[%c0_2, %c0_3, %c0_4, %c0_5] : memref<1x8x9x9xf32, #tpu.memory_space<vmem>>, vector<1x8x8x8xf32>
    %5 = vector.shape_cast %4 : vector<1x8x8x8xf32> to vector<8x8x8xf32>
    %6 = vector.shape_cast %5 : vector<8x8x8xf32> to vector<8x64xf32>
    %c0_6 = arith.constant 0 : index
    %c0_7 = arith.constant 0 : index
    %c0_8 = arith.constant 0 : index
    %7 = vector.load %arg7[%c0_6, %c0_7, %c0_8] : memref<9x8x8xf32, #tpu.memory_space<vmem>>, vector<1x8x8xf32>
    %8 = vector.shape_cast %7 : vector<1x8x8xf32> to vector<8x8xf32>
    %cst = arith.constant dense<0.000000e+00> : vector<8x64xf32>
    %9 = tpu.matmul %8, %6, %cst {dimension_numbers = #tpu.dot_dimension_numbers<[1], [0], [0], [1], [0, 0, 1, 1], [], []>} : vector<8x8xf32>, vector<8x64xf32>, vector<8x64xf32> -> vector<8x64xf32>
    %10 = arith.addf %3, %9 : vector<8x64xf32>
    %c0_9 = arith.constant 0 : index
    %c0_10 = arith.constant 0 : index
    %c0_11 = arith.constant 0 : index
    %c0_12 = arith.constant 0 : index
    %11 = vector.load %arg4[%c0_9, %c0_10, %c0_11, %c0_12] : memref<1x8x9x9xf32, #tpu.memory_space<vmem>>, vector<1x8x8x8xf32>
    %12 = vector.shape_cast %11 : vector<1x8x8x8xf32> to vector<8x8x8xf32>
    %13 = vector.shape_cast %12 : vector<8x8x8xf32> to vector<8x64xf32>
    %c1 = arith.constant 1 : index
    %c0_13 = arith.constant 0 : index
    %c0_14 = arith.constant 0 : index
    %14 = vector.load %arg7[%c1, %c0_13, %c0_14] : memref<9x8x8xf32, #tpu.memory_space<vmem>>, vector<1x8x8xf32>
    %15 = vector.shape_cast %14 : vector<1x8x8xf32> to vector<8x8xf32>
    %cst_15 = arith.constant dense<0.000000e+00> : vector<8x64xf32>
    %16 = tpu.matmul %15, %13, %cst_15 {dimension_numbers = #tpu.dot_dimension_numbers<[1], [0], [0], [1], [0, 0, 1, 1], [], []>} : vector<8x8xf32>, vector<8x64xf32>, vector<8x64xf32> -> vector<8x64xf32>
    %17 = arith.addf %10, %16 : vector<8x64xf32>
    %c0_16 = arith.constant 0 : index
    %c0_17 = arith.constant 0 : index
    %c0_18 = arith.constant 0 : index
    %c1_19 = arith.constant 1 : index
    %18 = vector.load %arg3[%c0_16, %c0_17, %c0_18, %c1_19] : memref<1x8x9x9xf32, #tpu.memory_space<vmem>>, vector<1x8x8x8xf32>
    %19 = vector.shape_cast %18 : vector<1x8x8x8xf32> to vector<8x8x8xf32>
    %20 = vector.shape_cast %19 : vector<8x8x8xf32> to vector<8x64xf32>
    %c2 = arith.constant 2 : index
    %c0_20 = arith.constant 0 : index
    %c0_21 = arith.constant 0 : index
    %21 = vector.load %arg7[%c2, %c0_20, %c0_21] : memref<9x8x8xf32, #tpu.memory_space<vmem>>, vector<1x8x8xf32>
    %22 = vector.shape_cast %21 : vector<1x8x8xf32> to vector<8x8xf32>
    %cst_22 = arith.constant dense<0.000000e+00> : vector<8x64xf32>
    %23 = tpu.matmul %22, %20, %cst_22 {dimension_numbers = #tpu.dot_dimension_numbers<[1], [0], [0], [1], [0, 0, 1, 1], [], []>} : vector<8x8xf32>, vector<8x64xf32>, vector<8x64xf32> -> vector<8x64xf32>
    %24 = arith.addf %17, %23 : vector<8x64xf32>
    %c0_23 = arith.constant 0 : index
    %c0_24 = arith.constant 0 : index
    %c0_25 = arith.constant 0 : index
    %c0_26 = arith.constant 0 : index
    %25 = vector.load %arg5[%c0_23, %c0_24, %c0_25, %c0_26] : memref<1x8x9x9xf32, #tpu.memory_space<vmem>>, vector<1x8x8x8xf32>
    %26 = vector.shape_cast %25 : vector<1x8x8x8xf32> to vector<8x8x8xf32>
    %27 = vector.shape_cast %26 : vector<8x8x8xf32> to vector<8x64xf32>
    %c3 = arith.constant 3 : index
    %c0_27 = arith.constant 0 : index
    %c0_28 = arith.constant 0 : index
    %28 = vector.load %arg7[%c3, %c0_27, %c0_28] : memref<9x8x8xf32, #tpu.memory_space<vmem>>, vector<1x8x8xf32>
    %29 = vector.shape_cast %28 : vector<1x8x8xf32> to vector<8x8xf32>
    %cst_29 = arith.constant dense<0.000000e+00> : vector<8x64xf32>
    %30 = tpu.matmul %29, %27, %cst_29 {dimension_numbers = #tpu.dot_dimension_numbers<[1], [0], [0], [1], [0, 0, 1, 1], [], []>} : vector<8x8xf32>, vector<8x64xf32>, vector<8x64xf32> -> vector<8x64xf32>
    %31 = arith.addf %24, %30 : vector<8x64xf32>
    %c0_30 = arith.constant 0 : index
    %c0_31 = arith.constant 0 : index
    %c0_32 = arith.constant 0 : index
    %c0_33 = arith.constant 0 : index
    %32 = vector.load %arg6[%c0_30, %c0_31, %c0_32, %c0_33] : memref<1x8x9x9xf32, #tpu.memory_space<vmem>>, vector<1x8x8x8xf32>
    %33 = vector.shape_cast %32 : vector<1x8x8x8xf32> to vector<8x8x8xf32>
    %34 = vector.shape_cast %33 : vector<8x8x8xf32> to vector<8x64xf32>
    %c4 = arith.constant 4 : index
    %c0_34 = arith.constant 0 : index
    %c0_35 = arith.constant 0 : index
    %35 = vector.load %arg7[%c4, %c0_34, %c0_35] : memref<9x8x8xf32, #tpu.memory_space<vmem>>, vector<1x8x8xf32>
    %36 = vector.shape_cast %35 : vector<1x8x8xf32> to vector<8x8xf32>
    %cst_36 = arith.constant dense<0.000000e+00> : vector<8x64xf32>
    %37 = tpu.matmul %36, %34, %cst_36 {dimension_numbers = #tpu.dot_dimension_numbers<[1], [0], [0], [1], [0, 0, 1, 1], [], []>} : vector<8x8xf32>, vector<8x64xf32>, vector<8x64xf32> -> vector<8x64xf32>
    %38 = arith.addf %31, %37 : vector<8x64xf32>
    %c0_37 = arith.constant 0 : index
    %c0_38 = arith.constant 0 : index
    %c0_39 = arith.constant 0 : index
    %c1_40 = arith.constant 1 : index
    %39 = vector.load %arg5[%c0_37, %c0_38, %c0_39, %c1_40] : memref<1x8x9x9xf32, #tpu.memory_space<vmem>>, vector<1x8x8x8xf32>
    %40 = vector.shape_cast %39 : vector<1x8x8x8xf32> to vector<8x8x8xf32>
    %41 = vector.shape_cast %40 : vector<8x8x8xf32> to vector<8x64xf32>
    %c5 = arith.constant 5 : index
    %c0_41 = arith.constant 0 : index
    %c0_42 = arith.constant 0 : index
    %42 = vector.load %arg7[%c5, %c0_41, %c0_42] : memref<9x8x8xf32, #tpu.memory_space<vmem>>, vector<1x8x8xf32>
    %43 = vector.shape_cast %42 : vector<1x8x8xf32> to vector<8x8xf32>
    %cst_43 = arith.constant dense<0.000000e+00> : vector<8x64xf32>
    %44 = tpu.matmul %43, %41, %cst_43 {dimension_numbers = #tpu.dot_dimension_numbers<[1], [0], [0], [1], [0, 0, 1, 1], [], []>} : vector<8x8xf32>, vector<8x64xf32>, vector<8x64xf32> -> vector<8x64xf32>
    %45 = arith.addf %38, %44 : vector<8x64xf32>
    %c0_44 = arith.constant 0 : index
    %c0_45 = arith.constant 0 : index
    %c1_46 = arith.constant 1 : index
    %c0_47 = arith.constant 0 : index
    %46 = vector.load %arg3[%c0_44, %c0_45, %c1_46, %c0_47] : memref<1x8x9x9xf32, #tpu.memory_space<vmem>>, vector<1x8x8x8xf32>
    %47 = vector.shape_cast %46 : vector<1x8x8x8xf32> to vector<8x8x8xf32>
    %48 = vector.shape_cast %47 : vector<8x8x8xf32> to vector<8x64xf32>
    %c6 = arith.constant 6 : index
    %c0_48 = arith.constant 0 : index
    %c0_49 = arith.constant 0 : index
    %49 = vector.load %arg7[%c6, %c0_48, %c0_49] : memref<9x8x8xf32, #tpu.memory_space<vmem>>, vector<1x8x8xf32>
    %50 = vector.shape_cast %49 : vector<1x8x8xf32> to vector<8x8xf32>
    %cst_50 = arith.constant dense<0.000000e+00> : vector<8x64xf32>
    %51 = tpu.matmul %50, %48, %cst_50 {dimension_numbers = #tpu.dot_dimension_numbers<[1], [0], [0], [1], [0, 0, 1, 1], [], []>} : vector<8x8xf32>, vector<8x64xf32>, vector<8x64xf32> -> vector<8x64xf32>
    %52 = arith.addf %45, %51 : vector<8x64xf32>
    %c0_51 = arith.constant 0 : index
    %c0_52 = arith.constant 0 : index
    %c1_53 = arith.constant 1 : index
    %c0_54 = arith.constant 0 : index
    %53 = vector.load %arg4[%c0_51, %c0_52, %c1_53, %c0_54] : memref<1x8x9x9xf32, #tpu.memory_space<vmem>>, vector<1x8x8x8xf32>
    %54 = vector.shape_cast %53 : vector<1x8x8x8xf32> to vector<8x8x8xf32>
    %55 = vector.shape_cast %54 : vector<8x8x8xf32> to vector<8x64xf32>
    %c7 = arith.constant 7 : index
    %c0_55 = arith.constant 0 : index
    %c0_56 = arith.constant 0 : index
    %56 = vector.load %arg7[%c7, %c0_55, %c0_56] : memref<9x8x8xf32, #tpu.memory_space<vmem>>, vector<1x8x8xf32>
    %57 = vector.shape_cast %56 : vector<1x8x8xf32> to vector<8x8xf32>
    %cst_57 = arith.constant dense<0.000000e+00> : vector<8x64xf32>
    %58 = tpu.matmul %57, %55, %cst_57 {dimension_numbers = #tpu.dot_dimension_numbers<[1], [0], [0], [1], [0, 0, 1, 1], [], []>} : vector<8x8xf32>, vector<8x64xf32>, vector<8x64xf32> -> vector<8x64xf32>
    %59 = arith.addf %52, %58 : vector<8x64xf32>
    %c0_58 = arith.constant 0 : index
    %c0_59 = arith.constant 0 : index
    %c1_60 = arith.constant 1 : index
    %c1_61 = arith.constant 1 : index
    %60 = vector.load %arg3[%c0_58, %c0_59, %c1_60, %c1_61] : memref<1x8x9x9xf32, #tpu.memory_space<vmem>>, vector<1x8x8x8xf32>
    %61 = vector.shape_cast %60 : vector<1x8x8x8xf32> to vector<8x8x8xf32>
    %62 = vector.shape_cast %61 : vector<8x8x8xf32> to vector<8x64xf32>
    %c8 = arith.constant 8 : index
    %c0_62 = arith.constant 0 : index
    %c0_63 = arith.constant 0 : index
    %63 = vector.load %arg7[%c8, %c0_62, %c0_63] : memref<9x8x8xf32, #tpu.memory_space<vmem>>, vector<1x8x8xf32>
    %64 = vector.shape_cast %63 : vector<1x8x8xf32> to vector<8x8xf32>
    %cst_64 = arith.constant dense<0.000000e+00> : vector<8x64xf32>
    %65 = tpu.matmul %64, %62, %cst_64 {dimension_numbers = #tpu.dot_dimension_numbers<[1], [0], [0], [1], [0, 0, 1, 1], [], []>} : vector<8x8xf32>, vector<8x64xf32>, vector<8x64xf32> -> vector<8x64xf32>
    %66 = arith.addf %59, %65 : vector<8x64xf32>
    %c0_65 = arith.constant 0 : index
    %c0_66 = arith.constant 0 : index
    %67 = vector.load %arg10[%c0_65, %c0_66] : memref<8x64xf32, #tpu.memory_space<vmem>>, vector<8x64xf32>
    tpu.vector_store %arg10[%c0_65, %c0_66], %66 {strides = array<i32>} : memref<8x64xf32, #tpu.memory_space<vmem>>, vector<8x64xf32>,
    %c0_i32_67 = arith.constant 0 : i32
    %68 = arith.cmpi eq, %arg2, %c0_i32_67 : i32
    %69 = arith.extui %68 : i1 to i32
    %c0_i32_68 = arith.constant 0 : i32
    %70 = arith.cmpi ne, %69, %c0_i32_68 : i32
    scf.if %70 {
      %c0_69 = arith.constant 0 : index
      %c0_70 = arith.constant 0 : index
      %71 = vector.load %arg10[%c0_69, %c0_70] : memref<8x64xf32, #tpu.memory_space<vmem>>, vector<8x64xf32>
      %c0_71 = arith.constant 0 : index
      %c0_72 = arith.constant 0 : index
      %72 = vector.load %arg8[%c0_71, %c0_72] : memref<8x1xf32, #tpu.memory_space<vmem>>, vector<8x1xf32>
      %73 = vector.broadcast %72 : vector<8x1xf32> to vector<8x64xf32>
      %74 = arith.addf %71, %73 : vector<8x64xf32>
      %c0_73 = arith.constant 0 : index
      %c0_74 = arith.constant 0 : index
      %c0_75 = arith.constant 0 : index
      %75 = vector.load %arg9[%c0_73, %c0_74, %c0_75] : memref<1x8x64xf32, #tpu.memory_space<vmem>>, vector<1x8x64xf32>
      %76 = vector.shape_cast %75 : vector<1x8x64xf32> to vector<8x64xf32>
      %77 = vector.shape_cast %74 : vector<8x64xf32> to vector<1x8x64xf32>
      tpu.vector_store %arg9[%c0_73, %c0_74, %c0_75], %77 {strides = array<i32>} : memref<1x8x64xf32, #tpu.memory_space<vmem>>, vector<1x8x64xf32>,
    } else {
    }
    return
  }
  func.func @transform_0(%arg0: i32, %arg1: i32, %arg2: i32) -> (i32, i32, i32, i32) {
    %c0_i32 = arith.constant 0 : i32
    %c0_i32_0 = arith.constant 0 : i32
    %c0_i32_1 = arith.constant 0 : i32
    return %arg0, %arg2, %c0_i32, %c0_i32_0 : i32, i32, i32, i32
  }
  func.func @transform_1(%arg0: i32, %arg1: i32, %arg2: i32) -> (i32, i32, i32, i32) {
    %c0_i32 = arith.constant 0 : i32
    %c0_i32_0 = arith.constant 0 : i32
    %c0_i32_1 = arith.constant 0 : i32
    return %arg0, %arg2, %c0_i32, %c0_i32_0 : i32, i32, i32, i32
  }
  func.func @transform_2(%arg0: i32, %arg1: i32, %arg2: i32) -> (i32, i32, i32, i32) {
    %c0_i32 = arith.constant 0 : i32
    %c0_i32_0 = arith.constant 0 : i32
    %c0_i32_1 = arith.constant 0 : i32
    return %arg0, %arg2, %c0_i32, %c0_i32_0 : i32, i32, i32, i32
  }
  func.func @transform_3(%arg0: i32, %arg1: i32, %arg2: i32) -> (i32, i32, i32, i32) {
    %c0_i32 = arith.constant 0 : i32
    %c0_i32_0 = arith.constant 0 : i32
    %c0_i32_1 = arith.constant 0 : i32
    return %arg0, %arg2, %c0_i32, %c0_i32_0 : i32, i32, i32, i32
  }
  func.func @transform_4(%arg0: i32, %arg1: i32, %arg2: i32) -> (i32, i32, i32) {
    %c0_i32 = arith.constant 0 : i32
    %c0_i32_0 = arith.constant 0 : i32
    return %c0_i32, %arg1, %arg2 : i32, i32, i32
  }
  func.func @transform_5(%arg0: i32, %arg1: i32, %arg2: i32) -> (i32, i32) {
    %c0_i32 = arith.constant 0 : i32
    %c0_i32_0 = arith.constant 0 : i32
    return %arg1, %c0_i32 : i32, i32
  }
  func.func @transform_6(%arg0: i32, %arg1: i32, %arg2: i32) -> (i32, i32, i32) {
    %c0_i32 = arith.constant 0 : i32
    %c0_i32_0 = arith.constant 0 : i32
    return %arg0, %arg1, %c0_i32 : i32, i32, i32
  }
}

</mosaic_0001>

<bundles_post_ra>
// kernel: tpu_custom_call.1
= control target key start
LH: loop header
LB: loop body
LE: loop exit
PB: predicated region body
PF: predicated region fallthrough
CT: control target
= control target key end

     0   :  { %11 = vsyncpa [#allocation4], 0  ;;  %s4398_s0 = inlined_call_operand.vmem [shape: f32[2,8,9,9], index: 0, kind: input, shape index: {}]   ;;  %s4399_s1 = inlined_call_operand.vmem [shape: f32[2,8,9,9], index: 1, kind: input, shape index: {}]   ;;  %s4400_s2 = inlined_call_operand.vmem [shape: f32[2,8,9,9], index: 2, kind: input, shape index: {}]   ;;  %s4401_s3 = inlined_call_operand.vmem [shape: f32[2,8,9,9], index: 3, kind: input, shape index: {}]   ;;  %s4402_s4 = inlined_call_operand.vmem [shape: f32[9,8,8], index: 4, kind: input, shape index: {}]   ;;  %s4403_s5 = inlined_call_operand.vmem [shape: f32[8,1], index: 5, kind: input, shape index: {}]   ;;  %s4404_s6 = inlined_call_operand.hbm [shape: f32[2,8,64], index: 6, kind: output, shape index: {}]  }
   0x1   :  { %13 = vsyncpa [#allocation4 + $0x1], 0  ;;  %s3362_s21 = smov 0   ;;  %s3364_s22 = smov 0  }
   0x2   :  { %s3366_s23 = smov 0   ;;  %s3368_s24 = smov 0  }
   0x3   :  { %s3370_s25 = smov 0   ;;  %s3372_s26 = smov 0  }
   0x4 LB: > { %s3061_s27 = sadd.s32 4294967295, %s3311_s26   ;;  %s3062_s28 = sadd.s32 4294967294, %s3311_s26   ;;  %s3311_s26 = sphi %s3372_s26, %s19_s26   ;;  %s3307_s25 = sphi %s3370_s25, %s4448_s25   ;;  %s3303_s24 = sphi %s3368_s24, %s4447_s24   ;;  %s3299_s23 = sphi %s3366_s23, %s4446_s23   ;;  %s3295_s22 = sphi %s3364_s22, %s4445_s22   ;;  %s3291_s21 = sphi %s3362_s21, %s4444_s21  }
   0x5   : > { %s38_s29 = sadd.s32 1, %s3307_s25  ;;  %s213_s30 = sadd.s32 1, %s3299_s23 }
   0x6   : > { %p40_p0 = scmp.ge.s32.totalorder %s38_s29, 2  ;;  %p223_p1 = scmp.ne.s32.totalorder %s3299_s23, %s3295_s22 }
   0x7   : > { %p224_p2 = scmp.eq.s32.totalorder %s3061_s27, 1  ;;  %p229_p3 = scmp.ne.s32.totalorder %s3295_s22, %s3291_s21 }
   0x8   : > { %s4450_s29 = smov (%p40_p0, %s38_s29), 0  ;;  %p230_p5 = scmp.eq.s32.totalorder %s3062_s28, 1 }
   0x9   : > { %p3402_p4 = por %p224_p2, %p223_p1  ;;  %s208_s8 = ssub.s32 %s3307_s25, %s4450_s29 }
   0xa   : > { %p3067_p6 = scmp.ge.s32.totalorder %s3311_s26, 1  ;;  %p211_p7 = scmp.eq.s32.totalorder %s208_s8, 0 }
   0xb   : > { %p3409_p8 = por %p230_p5, %p229_p3  ;;  %p321_p9 = scmp.lt.s32.totalorder %s3311_s26, 3 }
   0xc   : > { %s3415_s10 = scalar_select %p211_p7, %s3299_s23, %s213_s30  }
   0xd   : > { %p322_p10 = pnand %p3067_p6, %p321_p9 }
   0xf   : > { %325 = sbr.rel (%p322_p10) target bundleno = 562 (0x232), region = 44 }
  0x14   : > { %p398_p11 = scmp.lt.s32.totalorder %s3303_s24, 1  ;;  %s3313_s16 = smov 127   ;;  %v3314_v10 = vmov 1983009808   ;;  %v472_v12 = vlaneseq  ;;  %v3315_v19 = vmov 1934713408  }
  0x15   : > { %v470_v11 = vunpack.c.l.s4 %v3314_v10  ;;  %v534_v20 = vunpack.c.l.s4 %v3315_v19  ;;  %s3317_s13 = smov 16   ;;  %s3318_s14 = smov 24   ;;  %vm3324_vm0 = vmmov 0   ;;  %vm631_vm1 = vcmask 64512  }
  0x16   : > { %s399_s11 = scalar_select %p398_p11, %s3303_s24, 1  ;;  %v473_v16 = vshrl.u32 %v472_v12, 7  ;;  %vm633_vm2 = vcmask 130048   ;;  %vm635_vm3 = vcmask 195584   ;;  %vm637_vm4 = vcmask 261120  }
  0x17   : > { %v471_v15 = vunpack.c.0.s8 %v470_v11  ;;  %v535_v28 = vunpack.c.0.s8 %v534_v20  ;;  %s3321_s17 = smov 48   ;;  %s3323_s18 = smov 56   ;;  %vm639_vm5 = vcmask 326656   ;;  %vm641_vm6 = vcmask 392192  }
  0x18   : > { %s3419_s12 = sshll.u32 %s399_s11, 7  ;;  %vm643_vm7 = vcmask 457728   ;;  %vm456_vm8 = vcmask 523264   ;;  %s3326_s27 = smov [#allocation3]  }
  0x19   : > { %s3425_s15 = scalar_lea.vmem %s4398_s0, %s3419_s12  ;;  %s428_s19 = scalar_lea.vmem %s4400_s2, %s3419_s12  ;;  %v3493_v22 = vsub.s32 %v471_v15, %v473_v16  ;;  %v3535_v47 = vsub.s32 %v535_v28, %v473_v16 }
  0x1a   : > { %v3428_v0 = vld [vmem:[%s3425_s15 + $0x20] sm:$0xff]  ;;  %v3438_v2 = vld [vmem:[%s3425_s15 + $0x30] sm:$0xff]  ;;  %s3489_s28 = scalar_lea.vmem %s4399_s1, %s3419_s12  ;;  %s439_s11 = scalar_lea.vmem %s4401_s3, %s3419_s12 }
  0x1b   : > { %v3431_v1 = vld [vmem:[%s3425_s15] sm:$0xff]  ;;  %995 = vrot.lane.b32.xlu1 %v3428_v0, %s3313_s16  ;;  %v3441_v3 = vld [vmem:[%s3425_s15 + $0x10] sm:$0xff]  ;;  %s3316_s12 = smov 8  }
  0x1c   : > { %991 = vrot.lane.b32.xlu0 %v3431_v1, %s3313_s16  ;;  %v3448_v4 = vld [vmem:[%s3425_s15 + $0x50] sm:$0xff]  ;;  %v3451_v5 = vld [vmem:[%s3425_s15 + $0x40] sm:$0xff]  ;;  %v467_v21 = vcombine.low %v3431_v1, %v3428_v0  ;;  %v483_v24 = vcombine.low %v3441_v3, %v3438_v2  ;;  %v468_v31 = vcombine.high %v3431_v1, %v3428_v0  ;;  %v484_v39 = vcombine.high %v3441_v3, %v3438_v2 }
  0x1d   : > { %v982_v6 = vld [vmem:[%s3425_s15 + $0x70] sm:$0xff]  ;;  %v981_v7 = vld [vmem:[%s3425_s15 + $0x60] sm:$0xff] }
  0x1e   : > { %v3465_v8 = vld [vmem:[%s428_s19 + $0x10] sm:$0xff]  ;;  %v3467_v9 = vld [vmem:[%s428_s19] sm:$0xff]  ;;  %v499_v25 = vcombine.low %v3451_v5, %v981_v7  ;;  %v515_v26 = vcombine.low %v3448_v4, %v982_v6  ;;  %v475_v35 = vrot.slane %v467_v21, %v3493_v22  ;;  %v500_v40 = vcombine.high %v3451_v5, %v981_v7 }
  0x1f   : > { %997 = vrot.lane.b32.xlu1 %v3438_v2, %s3313_s16  ;;  %v3473_v13 = vld [vmem:[%s428_s19 + $0x30] sm:$0xff]  ;;  %v3475_v14 = vld [vmem:[%s428_s19 + $0x20] sm:$0xff]  ;;  %v516_v41 = vcombine.high %v3448_v4, %v982_v6  ;;  %v491_v42 = vrot.slane %v483_v24, %v3493_v22  ;;  %v482_v48 = vrot.slane %v468_v31, %v3493_v22  ;;  %v498_v53 = vrot.slane %v484_v39, %v3493_v22 }
  0x20   : > { %993 = vrot.lane.b32.xlu0 %v3441_v3, %s3313_s16  ;;  %v3481_v17 = vld [vmem:[%s428_s19 + $0x50] sm:$0xff]  ;;  %v3483_v18 = vld [vmem:[%s428_s19 + $0x40] sm:$0xff]  ;;  %v507_v43 = vrot.slane %v499_v25, %v3493_v22  ;;  %v523_v44 = vrot.slane %v515_v26, %v3493_v22  ;;  %v514_v54 = vrot.slane %v500_v40, %v3493_v22  ;;  %v1270_v56 = vcombine.low %v3467_v9, %v3475_v14 }
  0x21   : > { %v3499_v23 = vld [vmem:[%s428_s19 + $0x70] sm:$0xff]  ;;  %v3505_v27 = vld [vmem:[%s428_s19 + $0x60] sm:$0xff]  ;;  %v530_v55 = vrot.slane %v516_v41, %v3493_v22  ;;  %v531_v57 = vcombine.low %v475_v35, %v491_v42  ;;  %v532_v59 = vcombine.high %v475_v35, %v491_v42  ;;  %v548_v11 = vcombine.high %v482_v48, %v498_v53 }
  0x22   : > { %v720_v29 = vld [vmem:[%s3489_s28] sm:$0xff]  ;;  %v721_v30 = vld [vmem:[%s3489_s28 + $0x10] sm:$0xff]  ;;  %v563_v58 = vcombine.low %v507_v43, %v523_v44 }
  0x23   : > { %1001 = vrot.lane.b32.xlu1 %v3448_v4, %s3313_s16  ;;  %v722_v32 = vld [vmem:[%s3489_s28 + $0x20] sm:$0xff]  ;;  %v723_v33 = vld [vmem:[%s3489_s28 + $0x30] sm:$0xff]  ;;  %v579_v10 = vcombine.low %v514_v54, %v530_v55  ;;  %v3562_v12 = vrot.slane %v531_v57, %v3535_v47  ;;  %v580_v16 = vcombine.high %v514_v54, %v530_v55  ;;  %v1286_v54 = vcombine.low %v3465_v8, %v3473_v13 }
  0x24   : > { %999 = vrot.lane.b32.xlu0 %v3451_v5, %s3313_s16  ;;  %v724_v34 = vld [vmem:[%s3489_s28 + $0x40] sm:$0xff]  ;;  %v725_v36 = vld [vmem:[%s3489_s28 + $0x50] sm:$0xff]  ;;  %v728_v49 = vcombine.low %v720_v29, %v722_v32  ;;  %v744_v50 = vcombine.low %v721_v30, %v723_v33  ;;  %v729_v62 = vcombine.high %v720_v29, %v722_v32  ;;  %v745_v63 = vcombine.high %v721_v30, %v723_v33 }
  0x25   : > { %v726_v37 = vld [vmem:[%s3489_s28 + $0x60] sm:$0xff]  ;;  %v727_v38 = vld [vmem:[%s3489_s28 + $0x70] sm:$0xff]  ;;  %4415 = vst [vmem:[#allocation6_spill] sm:$0xff] %v3562_v12  ;;  %v3565_v15 = vrot.slane %v563_v58, %v3535_v47  ;;  %v3578_v32 = vrot.slane %v532_v59, %v3535_v47  ;;  %v3587_v35 = vrot.slane %v579_v10, %v3535_v47  ;;  %v1302_v55 = vcombine.low %v3483_v18, %v3505_v27 }
  0x26   : > { %v3530_v45 = vld [vmem:[%s3425_s15 + $0x11] sm:$0xff]  ;;  %v3533_v46 = vld [vmem:[%s3425_s15 + $0x1] sm:$0xff]  ;;  %v760_v51 = vcombine.low %v724_v34, %v726_v37  ;;  %v776_v52 = vcombine.low %v725_v36, %v727_v38  ;;  %v761_v0 = vcombine.high %v724_v34, %v726_v37  ;;  %v777_v1 = vcombine.high %v725_v36, %v727_v38 }
  0x27   : > { %1005 = vrot.lane.b32.xlu1 %v982_v6, %s3313_s16  ;;  %v3548_v60 = vld [vmem:[%s3425_s15 + $0x31] sm:$0xff]  ;;  %v3551_v61 = vld [vmem:[%s3425_s15 + $0x21] sm:$0xff]  ;;  %v736_v2 = vrot.slane %v728_v49, %v3493_v22  ;;  %v752_v3 = vrot.slane %v744_v50, %v3493_v22  ;;  %v564_v6 = vcombine.high %v507_v43, %v523_v44  ;;  %4416 = vst [vmem:[#allocation7_spill] sm:$0xff] %v3565_v15 }
  0x28   : > { %1003 = vrot.lane.b32.xlu0 %v981_v7, %s3313_s16  ;;  %v768_v4 = vrot.slane %v760_v51, %v3493_v22  ;;  %v784_v5 = vrot.slane %v776_v52, %v3493_v22  ;;  %v547_v7 = vcombine.low %v482_v48, %v498_v53  ;;  %v3568_v19 = vld [vmem:[%s3425_s15 + $0x51] sm:$0xff]  ;;  %v3571_v20 = vld [vmem:[%s3425_s15 + $0x41] sm:$0xff]  ;;  %v743_v21 = vrot.slane %v729_v62, %v3493_v22 }
  0x29   : > { %v759_v24 = vrot.slane %v745_v63, %v3493_v22  ;;  %v775_v25 = vrot.slane %v761_v0, %v3493_v22  ;;  %v791_v26 = vrot.slane %v777_v1, %v3493_v22  ;;  %v792_v28 = vcombine.low %v736_v2, %v752_v3  ;;  %v3602_v39 = vld [vmem:[%s3425_s15 + $0x71] sm:$0xff]  ;;  %v3605_v40 = vld [vmem:[%s3425_s15 + $0x61] sm:$0xff]  ;;  %s3319_s15 = smov 32  }
  0x2a   : > { %v824_v29 = vcombine.low %v768_v4, %v784_v5  ;;  %v793_v30 = vcombine.high %v736_v2, %v752_v3  ;;  %v825_v31 = vcombine.high %v768_v4, %v784_v5  ;;  %v3581_v33 = vrot.slane %v564_v6, %v3535_v47  ;;  %v3661_v6 = vld [vmem:[%s439_s11] sm:$0xff] }
  0x2b   : > { %1790 = vrot.lane.b32.xlu1 %v3465_v8, %s3313_s16  ;;  %v3584_v34 = vrot.slane %v547_v7, %v3535_v47  ;;  %v596_v36 = vcombine.high %v3562_v12, %v3565_v15  ;;  %v3596_v37 = vrot.slane %v548_v11, %v3535_v47  ;;  %v3599_v38 = vrot.slane %v580_v16, %v3535_v47  ;;  %v3663_v7 = vld [vmem:[%s439_s11 + $0x10] sm:$0xff]  ;;  %v3665_v10 = vld [vmem:[%s439_s11 + $0x20] sm:$0xff] }
  0x2c   : > { %1788 = vrot.lane.b32.xlu0 %v3467_v9, %s3313_s16  ;;  %v808_v41 = vcombine.low %v743_v21, %v759_v24  ;;  %v840_v42 = vcombine.low %v775_v25, %v791_v26  ;;  %v809_v43 = vcombine.high %v743_v21, %v759_v24  ;;  %v841_v44 = vcombine.high %v775_v25, %v791_v26  ;;  %v3681_v25 = vld [vmem:[%s439_s11 + $0x30] sm:$0xff]  ;;  %v3683_v26 = vld [vmem:[%s439_s11 + $0x40] sm:$0xff] }
  0x2d   : > { %v3608_v48 = vrot.slane %v792_v28, %v3535_v47  ;;  %v3611_v49 = vrot.slane %v824_v29, %v3535_v47  ;;  %v3614_v50 = vrot.slane %v793_v30, %v3535_v47  ;;  %v3617_v51 = vrot.slane %v825_v31, %v3535_v47  ;;  %v3685_v28 = vld [vmem:[%s439_s11 + $0x50] sm:$0xff]  ;;  %v3692_v29 = vld [vmem:[%s439_s11 + $0x60] sm:$0xff] }
  0x2e   : > { %v597_v52 = vcombine.low %v3578_v32, %v3581_v33  ;;  %v598_v53 = vcombine.high %v3578_v32, %v3581_v33  ;;  %v1318_v59 = vcombine.low %v3481_v17, %v3499_v23  ;;  %v3642_v62 = vrot.slane %v808_v41, %v3535_v47  ;;  %v3694_v30 = vld [vmem:[%s439_s11 + $0x70] sm:$0xff]  ;;  %v3780_v11 = vld [vmem:[%s3489_s28 + $0x61] sm:$0xff]  ;;  %s394_s11 = sand.u32 1, %s3295_s22  }
  0x2f   : > { %1794 = vrot.lane.b32.xlu1 %v3473_v13, %s3313_s16  ;;  %4417 = vst [vmem:[#allocation8_spill] sm:$0xff] %v3608_v48  ;;  %4418 = vst [vmem:[#allocation9_spill] sm:$0xff] %v3611_v49  ;;  %v3645_v63 = vrot.slane %v840_v42, %v3535_v47  ;;  %v3648_v0 = vrot.slane %v809_v43, %v3535_v47  ;;  %v3651_v1 = vrot.slane %v841_v44, %v3535_v47  ;;  %s2871_s19 = scalar_lea.sflag [#allocation4], %s394_s11 }
  0x30   : > { %1792 = vrot.lane.b32.xlu0 %v3475_v14, %s3313_s16  ;;  %v857_v2 = vcombine.high %v3608_v48, %v3611_v49  ;;  %v858_v3 = vcombine.low %v3614_v50, %v3617_v51  ;;  %v3673_v16 = vrot.slane %v1270_v56, %v3493_v22  ;;  %v3676_v21 = vrot.slane %v1286_v54, %v3493_v22 }
  0x31   : > { %v3679_v24 = vrot.slane %v1302_v55, %v3493_v22  ;;  %v3690_v56 = vrot.slane %v1318_v59, %v3493_v22  ;;  %v2068_v31 = vcombine.high %v3533_v46, %v3551_v61  ;;  %v2084_v32 = vcombine.high %v3530_v45, %v3548_v60 }
  0x32   : > { %v1525_v43 = vcombine.low %v3661_v6, %v3665_v10  ;;  %v1541_v44 = vcombine.low %v3663_v7, %v3681_v25  ;;  %v1557_v55 = vcombine.low %v3683_v26, %v3692_v29  ;;  %v1573_v59 = vcombine.low %v3685_v28, %v3694_v30 }
  0x33   : > { %1798 = vrot.lane.b32.xlu1 %v3481_v17, %s3313_s16  ;;  %v2098_v54 = vrot.slane %v2084_v32, %v3493_v22  ;;  %v2100_v41 = vcombine.high %v3571_v20, %v3605_v40  ;;  %v2116_v42 = vcombine.high %v3568_v19, %v3602_v39  ;;  %v1366_v32 = vcombine.low %v3679_v24, %v3690_v56 }
  0x34   : > { %1796 = vrot.lane.b32.xlu0 %v3483_v18, %s3313_s16  ;;  %v1335_v5 = vcombine.high %v3673_v16, %v3676_v21  ;;  %v3740_v58 = vrot.slane %v1541_v44, %v3493_v22  ;;  %v4420_v44 = vcombine.low %v3584_v34, %v3587_v35 }
  0x35   : > { %v2114_v4 = vrot.slane %v2100_v41, %v3493_v22  ;;  %v2130_v33 = vrot.slane %v2116_v42, %v3493_v22  ;;  %v3749_v41 = vld [vmem:[%s3489_s28 + $0x21] sm:$0xff]  ;;  %v3799_v48 = vrot.slane %v1366_v32, %v3535_v47  ;;  %v4423_v32 = vcombine.high %v3584_v34, %v3587_v35 }
  0x36   : > { %v1303_v34 = vcombine.high %v3483_v18, %v3505_v27 }
  0x37   : > { %1802 = vrot.lane.b32.xlu1 %v3499_v23, %s3313_s16  ;;  %v2180_v42 = vcombine.high %v2114_v4, %v2130_v33 }
  0x38   : > { %1800 = vrot.lane.b32.xlu0 %v3505_v27, %s3313_s16 }
  0x3b   : > { %2587 = vrot.lane.b32.xlu1 %v3530_v45, %s3313_s16 }
  0x3c   : > { %2585 = vrot.lane.b32.xlu0 %v3533_v46, %s3313_s16 }
  0x3f   : > { %2591 = vrot.lane.b32.xlu1 %v3548_v60, %s3313_s16 }
  0x40   : > { %2589 = vrot.lane.b32.xlu0 %v3551_v61, %s3313_s16 }
  0x43   : > { %2595 = vrot.lane.b32.xlu1 %v3568_v19, %s3313_s16 }
  0x44   : > { %2593 = vrot.lane.b32.xlu0 %v3571_v20, %s3313_s16 }
  0x47   : > { %2599 = vrot.lane.b32.xlu1 %v3602_v39, %s3313_s16 }
  0x48   : > { %2597 = vrot.lane.b32.xlu0 %v3605_v40, %s3313_s16  ;;  %s3320_s16 = smov 40  }
  0x4b   : > { %608 = vrot.lane.b32.xlu1 %v597_v52, %s3317_s13  ;;  %v2082_v52 = vrot.slane %v2068_v31, %v3493_v22  ;;  %v1334_v31 = vcombine.low %v3673_v16, %v3676_v21  ;;  %v3743_v16 = vld [vmem:[%s3489_s28 + $0x1] sm:$0xff]  ;;  %v3746_v21 = vld [vmem:[%s3489_s28 + $0x11] sm:$0xff] }
  0x4c   : > { %604 = vrot.lane.b32.xlu0 %v596_v36, %s3316_s12  ;;  %4419 = vst [vmem:[#allocation10_spill] sm:$0xff] %v3746_v21 }
  0x4d   : > { %v2147_v36 = vcombine.low %v2082_v52, %v2098_v54  ;;  %v2148_v57 = vcombine.high %v2082_v52, %v2098_v54  ;;  %v3762_v52 = vrot.slane %v1557_v55, %v3493_v22  ;;  %v3765_v54 = vrot.slane %v1573_v59, %v3493_v22 }
  0x4e   : > { %v3789_v55 = vrot.slane %v2180_v42, %v3535_v47  ;;  %v2323_v59 = vcombine.high %v3743_v16, %v3749_v41 }
  0x4f   : > { %865 = vrot.lane.b32.xlu1 %v857_v2, %s3316_s12  ;;  %v3737_v2 = vrot.slane %v1525_v43, %v3493_v22  ;;  %v3777_v43 = vld [vmem:[%s3489_s28 + $0x51] sm:$0xff] }
  0x50   : > { %612 = vrot.lane.b32.xlu0 %v598_v53, %s3318_s14  ;;  %v1367_v53 = vcombine.high %v3679_v24, %v3690_v56  ;;  %v3752_v24 = vrot.slane %v2147_v36, %v3535_v47  ;;  %v2179_v56 = vcombine.low %v2114_v4, %v2130_v33  ;;  %v3768_v36 = vld [vmem:[%s3489_s28 + $0x31] sm:$0xff]  ;;  %v3771_v4 = vld [vmem:[%s3489_s28 + $0x41] sm:$0xff]  ;;  %v3774_v33 = vrot.slane %v2148_v57, %v3535_v47 }
  0x51   : > { %4421 = vst [vmem:[#allocation11_spill] sm:$0xff] %v3777_v43  ;;  %v2339_v49 = vcombine.high %v3746_v21, %v3768_v36  ;;  %v3796_v57 = vrot.slane %v1334_v31, %v3535_v47  ;;  %v2355_v15 = vcombine.high %v3771_v4, %v3780_v11  ;;  %v2337_v31 = vrot.slane %v2323_v59, %v3493_v22 }
  0x52   : > { %v1271_v59 = vcombine.high %v3467_v9, %v3475_v14  ;;  %v1287_v21 = vcombine.high %v3465_v8, %v3473_v13  ;;  %v2202_v35 = vcombine.high %v3774_v33, %v3789_v55  ;;  %v1621_v9 = vcombine.low %v3762_v52, %v3765_v54 }
  0x53   : > { %869 = vrot.lane.b32.xlu1 %v858_v3, %s3317_s13  ;;  %v3786_v3 = vrot.slane %v2179_v56, %v3535_v47  ;;  %v2353_v42 = vrot.slane %v2339_v49, %v3493_v22  ;;  %v2369_v12 = vrot.slane %v2355_v15, %v3493_v22  ;;  %v3832_v15 = vrot.slane %v1335_v5, %v3535_v47 }
  0x54   : > { %616 = vrot.lane.b32.xlu0 %v4420_v44, %s3319_s15  ;;  %v3783_v44 = vld [vmem:[%s3489_s28 + $0x71] sm:$0xff]  ;;  %v1319_v8 = vcombine.high %v3481_v17, %v3499_v23  ;;  %v4425_v13 = vcombine.low %v3642_v62, %v3645_v63  ;;  %v4426_v14 = vcombine.low %v3596_v37, %v3599_v38  ;;  %v1381_v17 = vrot.slane %v1367_v53, %v3535_v47  ;;  %s3239_s28 = sshll.u32 %s3326_s27, 4  ;;  %s3240_s28 = int_to_ptr.vmem [resolvable:$false] %s3239_s28 }
  0x55   : > { %4422 = vst [vmem:[#allocation12_spill] sm:$0xff] %v3786_v3  ;;  %v2371_v56 = vcombine.high %v3777_v43, %v3783_v44  ;;  %v4424_v43 = vcombine.high %v3614_v50, %v3617_v51  ;;  %v2402_v50 = vcombine.low %v2337_v31, %v2353_v42  ;;  %v3859_v23 = vrot.slane %v1271_v59, %v3493_v22 }
  0x56   : > { %v3862_v5 = vrot.slane %v1287_v21, %v3493_v22  ;;  %v3875_v53 = vrot.slane %v1319_v8, %v3493_v22  ;;  %v3897_v8 = vrot.slane %v1621_v9, %v3535_v47  ;;  %v1398_v9 = vcombine.low %v3796_v57, %v3799_v48 }
  0x57   : > { %873 = vrot.lane.b32.xlu1 %v4424_v43, %s3318_s14  ;;  %v2385_v3 = vrot.slane %v2371_v56, %v3493_v22  ;;  %v2403_v43 = vcombine.high %v2337_v31, %v2353_v42  ;;  %v1589_v56 = vcombine.low %v3737_v2, %v3740_v58  ;;  %v3849_v18 = vrot.slane %v2402_v50, %v3535_v47 }
  0x58   : > { %620 = vrot.lane.b32.xlu0 %v4423_v32, %s3320_s16  ;;  %v3868_v42 = vrot.slane %v1303_v34, %v3493_v22  ;;  %v3322_v50 = vmov 0.0   ;;  %v4427_v34 = vcombine.high %v3596_v37, %v3599_v38  ;;  %v2083_v37 = vcombine.low %v3530_v45, %v3548_v60 }
  0x59   : > { %v2434_v51 = vcombine.low %v2369_v12, %v2385_v3  ;;  %v2435_v49 = vcombine.high %v2369_v12, %v2385_v3  ;;  %v3855_v12 = vrot.slane %v2403_v43, %v3535_v47  ;;  %3120 = vmatprep.subr.mxu0 %v3322_v50  ;;  %3125 = vmatprep.subr.mxu1 %v3322_v50 }
  0x5a   : > { %v1399_v43 = vcombine.high %v3796_v57, %v3799_v48  ;;  %v2099_v38 = vcombine.low %v3571_v20, %v3605_v40  ;;  %v1350_v45 = vcombine.low %v3859_v23, %v3862_v5  ;;  %v1382_v60 = vcombine.low %v3868_v42, %v3875_v53  ;;  %3127 = vmatprep.mubr.msk.f32.mxu1 %vm3324_vm0, %v3322_v50 }
  0x5b   : > { %624 = vrot.lane.b32.xlu1 %v4426_v14, %s3321_s17  ;;  %v3852_v27 = vrot.slane %v2434_v51, %v3535_v47  ;;  %v3865_v3 = vrot.slane %v2435_v49, %v3535_v47  ;;  %v4428_v51 = vcombine.high %v3642_v62, %v3645_v63  ;;  %v3894_v49 = vrot.slane %v1589_v56, %v3535_v47 }
  0x5c   : > { %877 = vrot.lane.b32.xlu0 %v4425_v13, %s3319_s15  ;;  %v2067_v13 = vcombine.low %v3533_v46, %v3551_v61  ;;  %v2115_v62 = vcombine.low %v3568_v19, %v3602_v39  ;;  %v1590_v63 = vcombine.high %v3737_v2, %v3740_v58  ;;  %v1622_v56 = vcombine.high %v3762_v52, %v3765_v54 }
  0x5d   : > { %v2454_v31 = vcombine.low %v3849_v18, %v3852_v27  ;;  %v2455_v32 = vcombine.high %v3849_v18, %v3852_v27  ;;  %v2456_v59 = vcombine.low %v3855_v12, %v3865_v3  ;;  %v2457_v21 = vcombine.high %v3855_v12, %v3865_v3  ;;  %3122 = vmatprep.mubr.msk.f32.mxu0 %vm3324_vm0, %v3322_v50 }
  0x5e   : > { %v1653_v46 = vcombine.low %v3894_v49, %v3897_v8  ;;  %v1526_v61 = vcombine.high %v3661_v6, %v3665_v10  ;;  %v1542_v19 = vcombine.high %v3663_v7, %v3681_v25  ;;  %v4429_v20 = vcombine.low %v3648_v0, %v3651_v1  ;;  %457 = vst.msk [vmem:[#allocation2] sm:$0xff] %vm456_vm8, %v3322_v50 }
  0x5f   : > { %881 = vrot.lane.b32.xlu1 %v4428_v51, %s3320_s16  ;;  %v1400_v39 = vcombine.low %v3832_v15, %v1381_v17  ;;  %v1558_v40 = vcombine.high %v3683_v26, %v3692_v29  ;;  %v1574_v58 = vcombine.high %v3685_v28, %v3694_v30  ;;  %v3934_v6 = vrot.slane %v2067_v13, %v3493_v22 }
  0x60   : > { %628 = vrot.lane.b32.xlu0 %v4427_v34, %s3323_s18  ;;  %v3937_v7 = vrot.slane %v2083_v37, %v3493_v22  ;;  %v3940_v10 = vrot.slane %v2099_v38, %v3493_v22  ;;  %v3943_v25 = vrot.slane %v2115_v62, %v3493_v22  ;;  %v1401_v2 = vcombine.high %v3832_v15, %v1381_v17 }
  0x61   : > { %v1604_v52 = vrot.slane %v1590_v63, %v3535_v47  ;;  %v1636_v26 = vrot.slane %v1622_v56, %v3535_v47  ;;  %v1358_v28 = vrot.slane %v1350_v45, %v3535_v47  ;;  %v1390_v29 = vrot.slane %v1382_v60, %v3535_v47  ;;  %v4431_v56 = vld [vmem:[#allocation10_spill] sm:$0xff] }
  0x62   : > { %v1540_v30 = vrot.slane %v1526_v61, %v3493_v22  ;;  %v1556_v54 = vrot.slane %v1542_v19, %v3493_v22  ;;  %v4430_v14 = vcombine.high %v3648_v0, %v3651_v1  ;;  %v1654_v15 = vcombine.high %v3894_v49, %v3897_v8 }
  0x63   : > { %1407 = vrot.lane.b32.xlu1 %v1399_v43, %s3316_s12  ;;  %v1572_v17 = vrot.slane %v1558_v40, %v3493_v22  ;;  %v1588_v34 = vrot.slane %v1574_v58, %v3493_v22  ;;  %v2131_v51 = vcombine.low %v3934_v6, %v3937_v7  ;;  %v2163_v43 = vcombine.low %v3940_v10, %v3943_v25 }
  0x64   : > { %885 = vrot.lane.b32.xlu0 %v4429_v20, %s3321_s17  ;;  %v1351_v13 = vcombine.high %v3859_v23, %v3862_v5  ;;  %v1402_v37 = vcombine.low %v1358_v28, %v1390_v29  ;;  %v1655_v38 = vcombine.low %v1604_v52, %v1636_v26  ;;  %v1383_v0 = vcombine.high %v3868_v42, %v3875_v53  ;;  %v4432_v42 = vld [vmem:[#allocation11_spill] sm:$0xff] }
  0x65   : > { %v1605_v1 = vcombine.low %v1540_v30, %v1556_v54  ;;  %v1637_v62 = vcombine.low %v1572_v17, %v1588_v34  ;;  %v2322_v63 = vcombine.low %v3743_v16, %v3749_v41  ;;  %v2338_v45 = vcombine.low %v4431_v56, %v3768_v36 }
  0x66   : > { %v3976_v60 = vrot.slane %v2131_v51, %v3535_v47  ;;  %v3979_v23 = vrot.slane %v2163_v43, %v3535_v47  ;;  %v2354_v5 = vcombine.low %v3771_v4, %v3780_v11  ;;  %v2370_v53 = vcombine.low %v4432_v42, %v3783_v44 }
  0x67   : > { %889 = vrot.lane.b32.xlu1 %v4430_v14, %s3323_s18  ;;  %v1656_v61 = vcombine.high %v1604_v52, %v1636_v26  ;;  %v1365_v19 = vrot.slane %v1351_v13, %v3535_v47  ;;  %v1403_v20 = vcombine.high %v1358_v28, %v1390_v29  ;;  %v1397_v16 = vrot.slane %v1383_v0, %v3535_v47 }
  0x68   : > { %1411 = vrot.lane.b32.xlu0 %v1400_v39, %s3317_s13  ;;  %v2195_v41 = vcombine.low %v3976_v60, %v3979_v23  ;;  %v1613_v36 = vrot.slane %v1605_v1, %v3535_v47  ;;  %v1645_v11 = vrot.slane %v1637_v62, %v3535_v47  ;;  %v3994_v4 = vrot.slane %v2322_v63, %v3493_v22 }
  0x69   : > { %v3997_v44 = vrot.slane %v2338_v45, %v3493_v22  ;;  %v4000_v39 = vrot.slane %v2354_v5, %v3493_v22  ;;  %v4003_v40 = vrot.slane %v2370_v53, %v3493_v22  ;;  %v1606_v58 = vcombine.high %v1540_v30, %v1556_v54 }
  0x6a   : > { %v1404_v52 = vcombine.low %v1365_v19, %v1397_v16  ;;  %v1657_v26 = vcombine.low %v1613_v36, %v1645_v11  ;;  %v1405_v14 = vcombine.high %v1365_v19, %v1397_v16  ;;  %v1658_v30 = vcombine.high %v1613_v36, %v1645_v11 }
  0x6b   : > { %1415 = vrot.lane.b32.xlu1 %v1401_v2, %s3318_s14  ;;  %v1638_v2 = vcombine.high %v1572_v17, %v1588_v34  ;;  %v2386_v28 = vcombine.low %v3994_v4, %v3997_v44  ;;  %v2418_v29 = vcombine.low %v4000_v39, %v4003_v40  ;;  %v2132_v54 = vcombine.high %v3934_v6, %v3937_v7 }
  0x6c   : > { %1662 = vrot.lane.b32.xlu0 %v1654_v15, %s3316_s12  ;;  %v1620_v15 = vrot.slane %v1606_v58, %v3535_v47  ;;  %v2164_v17 = vcombine.high %v3940_v10, %v3943_v25  ;;  %v2196_v6 = vcombine.high %v3976_v60, %v3979_v23 }
  0x6d   : > { %v1652_v51 = vrot.slane %v1638_v2, %v3535_v47  ;;  %v4024_v34 = vrot.slane %v2386_v28, %v3535_v47  ;;  %v4027_v43 = vrot.slane %v2418_v29, %v3535_v47  ;;  %v2146_v7 = vrot.slane %v2132_v54, %v3535_v47 }
  0x6e   : > { %v2178_v10 = vrot.slane %v2164_v17, %v3535_v47 }
  0x6f   : > { %1666 = vrot.lane.b32.xlu1 %v1655_v38, %s3317_s13  ;;  %v1659_v13 = vcombine.low %v1620_v15, %v1652_v51  ;;  %v1660_v25 = vcombine.high %v1620_v15, %v1652_v51  ;;  %v2451_v1 = vcombine.high %v4024_v34, %v4027_v43 }
  0x70   : > { %1419 = vrot.lane.b32.xlu0 %v1402_v37, %s3319_s15  ;;  %v2197_v38 = vcombine.low %v2146_v7, %v2178_v10  ;;  %v2198_v0 = vcombine.high %v2146_v7, %v2178_v10 }
  0x73   : > { %1423 = vrot.lane.b32.xlu1 %v1403_v20, %s3320_s16 }
  0x74   : > { %1670 = vrot.lane.b32.xlu0 %v1656_v61, %s3318_s14 }
  0x77   : > { %1674 = vrot.lane.b32.xlu1 %v1657_v26, %s3319_s15 }
  0x78   : > { %1427 = vrot.lane.b32.xlu0 %v1404_v52, %s3321_s17 }
  0x7b   : > { %1431 = vrot.lane.b32.xlu1 %v1405_v14, %s3323_s18 }
  0x7c   : > { %1678 = vrot.lane.b32.xlu0 %v1658_v30, %s3320_s16 }
  0x7f   : > { %1682 = vrot.lane.b32.xlu1 %v1659_v13, %s3321_s17 }
  0x80   : > { %2204 = vrot.lane.b32.xlu0 %v2196_v6, %s3316_s12 }
  0x83   : > { %2208 = vrot.lane.b32.xlu1 %v2197_v38, %s3317_s13 }
  0x84   : > { %1686 = vrot.lane.b32.xlu0 %v1660_v25, %s3323_s18 }
  0x87   : > { %2459 = vrot.lane.b32.xlu1 %v2451_v1, %s3316_s12 }
  0x88   : > { %2212 = vrot.lane.b32.xlu0 %v2198_v0, %s3318_s14 }
  0x8d   : > { %v996_v62 = vpop.permute.xlu1 %995 }
  0x8e   : > { %v992_v63 = vpop.permute.xlu0 %991 }
  0x8f   : > { %v1015_v61 = vcombine.low %v992_v63, %v996_v62  ;;  %v1016_v26 = vcombine.high %v992_v63, %v996_v62 }
  0x91   : > { %v998_v56 = vpop.permute.xlu1 %997  ;;  %v1023_v28 = vrot.slane %v1015_v61, %v3493_v22  ;;  %v1030_v25 = vrot.slane %v1016_v26, %v3493_v22 }
  0x92   : > { %v994_v45 = vpop.permute.xlu0 %993 }
  0x93   : > { %v1031_v5 = vcombine.low %v994_v45, %v998_v56  ;;  %v1032_v19 = vcombine.high %v994_v45, %v998_v56 }
  0x95   : > { %v1002_v42 = vpop.permute.xlu1 %1001  ;;  %v1039_v20 = vrot.slane %v1031_v5, %v3493_v22  ;;  %v1046_v30 = vrot.slane %v1032_v19, %v3493_v22 }
  0x96   : > { %v1000_v53 = vpop.permute.xlu0 %999 }
  0x97   : > { %v1079_v54 = vcombine.low %v1023_v28, %v1039_v20  ;;  %v1080_v17 = vcombine.high %v1023_v28, %v1039_v20  ;;  %v1095_v62 = vcombine.low %v1030_v25, %v1046_v30  ;;  %v1096_v20 = vcombine.high %v1030_v25, %v1046_v30 }
  0x99   : > { %v1006_v16 = vpop.permute.xlu1 %1005  ;;  %v1094_v45 = vrot.slane %v1080_v17, %v3535_v47  ;;  %v4059_v5 = vrot.slane %v1079_v54, %v3535_v47 }
  0x9a   : > { %v1004_v36 = vpop.permute.xlu0 %1003  ;;  %v1063_v11 = vcombine.low %v1002_v42, %v1006_v16  ;;  %v1064_v58 = vcombine.high %v1002_v42, %v1006_v16 }
  0x9b   : > { %v1047_v2 = vcombine.low %v1000_v53, %v1004_v36  ;;  %v1048_v52 = vcombine.high %v1000_v53, %v1004_v36 }
  0x9c   : > { %v1071_v29 = vrot.slane %v1063_v11, %v3493_v22  ;;  %v1078_v14 = vrot.slane %v1064_v58, %v3493_v22 }
  0x9d   : > { %v1055_v15 = vrot.slane %v1047_v2, %v3493_v22  ;;  %v1062_v51 = vrot.slane %v1048_v52, %v3493_v22  ;;  %v1791_v13 = vpop.permute.xlu1 %1790  ;;  %v1103_v2 = vrot.slane %v1095_v62, %v3535_v47 }
  0x9e   : > { %v1789_v6 = vpop.permute.xlu0 %1788 }
  0x9f   : > { %v1111_v7 = vcombine.low %v1055_v15, %v1071_v29  ;;  %v1112_v10 = vcombine.high %v1055_v15, %v1071_v29  ;;  %v1127_v38 = vcombine.low %v1062_v51, %v1078_v14  ;;  %v1128_v42 = vcombine.high %v1062_v51, %v1078_v14 }
  0xa0   : > { %v1110_v15 = vrot.slane %v1096_v20, %v3535_v47 }
  0xa1   : > { %v1126_v0 = vrot.slane %v1112_v10, %v3535_v47  ;;  %v4055_v1 = vrot.slane %v1111_v7, %v3535_v47  ;;  %v1795_v63 = vpop.permute.xlu1 %1794  ;;  %v1135_v19 = vrot.slane %v1127_v38, %v3535_v47  ;;  %v1142_v52 = vrot.slane %v1128_v42, %v3535_v47 }
  0xa2   : > { %v1793_v56 = vpop.permute.xlu0 %1792  ;;  %v1828_v16 = vcombine.low %v1791_v13, %v1795_v63  ;;  %v1829_v26 = vcombine.high %v1791_v13, %v1795_v63 }
  0xa3   : > { %v1145_v53 = vcombine.low %v1094_v45, %v1126_v0  ;;  %v1144_v61 = vcombine.high %v4059_v5, %v4055_v1  ;;  %v1812_v36 = vcombine.low %v1789_v6, %v1793_v56  ;;  %v1147_v28 = vcombine.low %v1103_v2, %v1135_v19 }
  0xa4   : > { %v1146_v29 = vcombine.high %v1094_v45, %v1126_v0  ;;  %v1143_v14 = vcombine.low %v4059_v5, %v4055_v1  ;;  %v1836_v51 = vrot.slane %v1828_v16, %v3493_v22  ;;  %v1813_v30 = vcombine.high %v1789_v6, %v1793_v56 }
  0xa5   : > { %1156 = vrot.lane.b32.xlu1 %v1145_v53, %s3317_s13  ;;  %1152 = vrot.lane.b32.xlu0 %v1144_v61, %s3316_s12  ;;  %v1799_v11 = vpop.permute.xlu1 %1798  ;;  %v1820_v54 = vrot.slane %v1812_v36, %v3493_v22  ;;  %v1843_v0 = vrot.slane %v1829_v26, %v3493_v22  ;;  %v1149_v62 = vcombine.low %v1110_v15, %v1142_v52 }
  0xa6   : > { %v1797_v58 = vpop.permute.xlu0 %1796  ;;  %v1148_v63 = vcombine.high %v1103_v2, %v1135_v19  ;;  %v1827_v53 = vrot.slane %v1813_v30, %v3493_v22  ;;  %v1150_v2 = vcombine.high %v1110_v15, %v1142_v52 }
  0xa7   : > { %v1876_v61 = vcombine.low %v1820_v54, %v1836_v51  ;;  %v1877_v20 = vcombine.high %v1820_v54, %v1836_v51 }
  0xa9   : > { %1164 = vrot.lane.b32.xlu1 %v1147_v28, %s3319_s15  ;;  %1160 = vrot.lane.b32.xlu0 %v1146_v29, %s3318_s14  ;;  %v1803_v17 = vpop.permute.xlu1 %1802  ;;  %v1892_v29 = vcombine.low %v1827_v53, %v1843_v0  ;;  %v4097_v54 = vrot.slane %v1876_v61, %v3535_v47 }
  0xaa   : > { %v1801_v7 = vpop.permute.xlu0 %1800  ;;  %v1860_v10 = vcombine.low %v1799_v11, %v1803_v17  ;;  %v1861_v13 = vcombine.high %v1799_v11, %v1803_v17  ;;  %v1891_v17 = vrot.slane %v1877_v20, %v3535_v47 }
  0xab   : > { %v1844_v25 = vcombine.low %v1797_v58, %v1801_v7  ;;  %v1845_v38 = vcombine.high %v1797_v58, %v1801_v7 }
  0xac   : > { %v1868_v45 = vrot.slane %v1860_v10, %v3493_v22  ;;  %v1875_v6 = vrot.slane %v1861_v13, %v3493_v22  ;;  %v2387_v13 = vcombine.high %v3994_v4, %v3997_v44 }
  0xad   : > { %v1852_v56 = vrot.slane %v1844_v25, %v3493_v22  ;;  %v1859_v42 = vrot.slane %v1845_v38, %v3493_v22  ;;  %1172 = vrot.lane.b32.xlu1 %v1149_v62, %s3321_s17  ;;  %1168 = vrot.lane.b32.xlu0 %v1148_v63, %s3320_s16  ;;  %v4083_v16 = vpop.permute.xlu1 %2587  ;;  %v1893_v25 = vcombine.high %v1827_v53, %v1843_v0 }
  0xae   : > { %v4085_v36 = vpop.permute.xlu0 %2585  ;;  %v1900_v63 = vrot.slane %v1892_v29, %v3535_v47 }
  0xaf   : > { %v1908_v19 = vcombine.low %v1852_v56, %v1868_v45  ;;  %v1909_v11 = vcombine.high %v1852_v56, %v1868_v45  ;;  %v1924_v58 = vcombine.low %v1859_v42, %v1875_v6  ;;  %v1925_v7 = vcombine.high %v1859_v42, %v1875_v6 }
  0xb0   : > { %v2419_v45 = vcombine.high %v4000_v39, %v4003_v40  ;;  %v1907_v39 = vrot.slane %v1893_v25, %v3535_v47  ;;  %v2401_v40 = vrot.slane %v2387_v13, %v3535_v47 }
  0xb1   : > { %v4088_v26 = vrot.slane %v1908_v19, %v3535_v47  ;;  %v1923_v28 = vrot.slane %v1909_v11, %v3535_v47  ;;  %1176 = vrot.lane.b32.xlu0 %v1150_v2, %s3323_s18  ;;  %v4092_v51 = vpop.permute.xlu1 %2591  ;;  %v1932_v10 = vrot.slane %v1924_v58, %v3535_v47  ;;  %v1939_v56 = vrot.slane %v1925_v7, %v3535_v47 }
  0xb2   : > { %v4094_v30 = vpop.permute.xlu0 %2589  ;;  %v2625_v6 = vcombine.low %v4083_v16, %v4092_v51  ;;  %v2433_v20 = vrot.slane %v2419_v45, %v3535_v47 }
  0xb3   : > { %v1941_v52 = vcombine.high %v4097_v54, %v4088_v26  ;;  %v1942_v15 = vcombine.low %v1891_v17, %v1923_v28  ;;  %v2609_v4 = vcombine.low %v4085_v36, %v4094_v30  ;;  %v1943_v44 = vcombine.high %v1891_v17, %v1923_v28 }
  0xb4   : > { %v1944_v0 = vcombine.low %v1900_v63, %v1932_v10  ;;  %v1940_v42 = vcombine.low %v4097_v54, %v4088_v26  ;;  %v2633_v19 = vrot.slane %v2625_v6, %v3493_v22  ;;  %v1945_v28 = vcombine.high %v1900_v63, %v1932_v10  ;;  %v4433_v6 = vld [vmem:[#allocation6_spill] sm:$0xff]  ;;  %v3086_v26 = vld [vmem:[%s4402_s4 + $0x28] sm:$0xff] }
  0xb5   : > { %1949 = vrot.lane.b32.xlu1 %v1941_v52, %s3316_s12  ;;  %1953 = vrot.lane.b32.xlu0 %v1942_v15, %s3317_s13  ;;  %v4107_v38 = vpop.permute.xlu1 %2595  ;;  %v2617_v11 = vrot.slane %v2609_v4, %v3493_v22  ;;  %v1946_v29 = vcombine.low %v1907_v39, %v1939_v56  ;;  %v2452_v52 = vcombine.low %v2401_v40, %v2433_v20  ;;  %v4434_v4 = vld [vmem:[#allocation7_spill] sm:$0xff] }
  0xb6   : > { %v4109_v62 = vpop.permute.xlu0 %2593  ;;  %v1947_v37 = vcombine.high %v1907_v39, %v1939_v56 }
  0xb7   : > { %v2673_v25 = vcombine.low %v2617_v11, %v2633_v19 }
  0xb9   : > { %1957 = vrot.lane.b32.xlu1 %v1943_v44, %s3318_s14  ;;  %1961 = vrot.lane.b32.xlu0 %v1944_v0, %s3319_s15  ;;  %v2600_v53 = vpop.permute.xlu1 %2599  ;;  %v4435_v44 = vcombine.low %v4433_v6, %v4434_v4  ;;  %v4436_v0 = vld [vmem:[#allocation12_spill] sm:$0xff] }
  0xba   : > { %v2598_v61 = vpop.permute.xlu0 %2597  ;;  %v2657_v58 = vcombine.low %v4107_v38, %v2600_v53  ;;  %v2658_v56 = vcombine.high %v4107_v38, %v2600_v53 }
  0xbb   : > { %v2641_v2 = vcombine.low %v4109_v62, %v2598_v61  ;;  %v2642_v39 = vcombine.high %v4109_v62, %v2598_v61 }
  0xbc   : > { %v2665_v17 = vrot.slane %v2657_v58, %v3493_v22  ;;  %v4437_v58 = vcombine.low %v3752_v24, %v4436_v0 }
  0xbd   : > { %v2649_v7 = vrot.slane %v2641_v2, %v3493_v22  ;;  %1965 = vrot.lane.b32.xlu1 %v1945_v28, %s3320_s16  ;;  %1969 = vrot.lane.b32.xlu0 %v1946_v29, %s3321_s17  ;;  %v609_v13 = vpop.permute.xlu1 %608  ;;  %v4147_v29 = vrot.slane %v2673_v25, %v3535_v47 }
  0xbe   : > { %v605_v15 = vpop.permute.xlu0 %604 }
  0xbf   : > { %v2705_v45 = vcombine.low %v2649_v7, %v2665_v17  ;;  %v632_v10 = vsel %vm631_vm1, %v4435_v44, %v605_v15 }
  0xc0   : > { %v634_v6 = vsel %vm633_vm2, %v632_v10, %v609_v13  ;;  %v2706_v13 = vcombine.high %v2649_v7, %v2665_v17 }
  0xc1   : > { %v4139_v63 = vrot.slane %v2705_v45, %v3535_v47  ;;  %2216 = vrot.lane.b32.xlu1 %v4437_v58, %s3319_s15  ;;  %2463 = vrot.lane.b32.xlu0 %v2452_v52, %s3317_s13  ;;  %v866_v28 = vpop.permute.xlu1 %865  ;;  %v4438_v45 = vcombine.high %v3752_v24, %v4436_v0  ;;  %v2453_v52 = vcombine.high %v2401_v40, %v2433_v20  ;;  %v4439_v58 = vld [vmem:[#allocation8_spill] sm:$0xff]  ;;  %v4440_v24 = vld [vmem:[#allocation9_spill] sm:$0xff] }
  0xc2   : > { %v613_v2 = vpop.permute.xlu0 %612  ;;  %v4441_v0 = vcombine.low %v4439_v58, %v4440_v24  ;;  %v2610_v20 = vcombine.high %v4085_v36, %v4094_v30  ;;  %v2720_v61 = vrot.slane %v2706_v13, %v3535_v47 }
  0xc3   : > { %v2737_v15 = vcombine.low %v4147_v29, %v4139_v63  ;;  %v636_v25 = vsel %vm635_vm3, %v634_v6, %v613_v2  ;;  %v2738_v10 = vcombine.high %v4147_v29, %v4139_v63  ;;  %v2674_v2 = vcombine.high %v2617_v11, %v2633_v19 }
  0xc4   : > { %v892_v40 = vsel %vm631_vm1, %v4441_v0, %v866_v28  ;;  %v2624_v19 = vrot.slane %v2610_v20, %v3493_v22  ;;  %v4442_v11 = vcombine.low %v3774_v33, %v3789_v55  ;;  %v3325_v20 = vmov 0  }
  0xc5   : > { %1973 = vrot.lane.b32.xlu1 %v1947_v37, %s3323_s18  ;;  %2220 = vrot.lane.b32.xlu0 %v4438_v45, %s3320_s16  ;;  %v870_v44 = vpop.permute.xlu1 %869  ;;  %v2626_v37 = vcombine.high %v4083_v16, %v4092_v51  ;;  %v2672_v16 = vrot.slane %v2658_v56, %v3493_v22  ;;  %v2656_v51 = vrot.slane %v2642_v39, %v3493_v22  ;;  %v645_v39 = vld [vmem:[%s4402_s4] sm:$0xff] }
  0xc6   : > { %v617_v4 = vpop.permute.xlu0 %616  ;;  %v893_v17 = vsel %vm633_vm2, %v892_v40, %v870_v44  ;;  %v2688_v7 = vrot.slane %v2674_v2, %v3535_v47  ;;  %3233 = vset.pattern.permute.xlu1 %v3325_v20  ;;  %3234 = vset.pattern.permute.xlu0 %v3325_v20  ;;  %v3078_v2 = vld [vmem:[%s4402_s4 + $0x8] sm:$0xff] }
  0xc7   : > { %v638_v38 = vsel %vm637_vm4, %v636_v25, %v617_v4  ;;  %v2640_v30 = vrot.slane %v2626_v37, %v3493_v22  ;;  %v2722_v24 = vcombine.high %v2656_v51, %v2672_v16 }
  0xc8   : > { %v2739_v4 = vcombine.low %v2688_v7, %v2720_v61 }
  0xc9   : > { %2467 = vrot.lane.b32.xlu1 %v2453_v52, %s3318_s14  ;;  %2746 = vrot.lane.b32.xlu0 %v2738_v10, %s3316_s12  ;;  %v874_v53 = vpop.permute.xlu1 %873  ;;  %v2721_v52 = vcombine.low %v2656_v51, %v2672_v16  ;;  %v2689_v44 = vcombine.low %v2624_v19, %v2640_v30  ;;  %v2740_v10 = vcombine.high %v2688_v7, %v2720_v61  ;;  %s3068_s12 = sshll.u32 %s394_s11, 3 }
  0xca   : > { %v621_v62 = vpop.permute.xlu0 %620  ;;  %v894_v45 = vsel %vm635_vm3, %v893_v17, %v874_v53  ;;  %v2690_v18 = vcombine.high %v2624_v19, %v2640_v30  ;;  %v2736_v53 = vrot.slane %v2722_v24, %v3535_v47 }
  0xcb   : > { %v640_v36 = vsel %vm639_vm5, %v638_v38, %v621_v62  ;;  %v2729_v37 = vrot.slane %v2721_v52, %v3535_v47  ;;  %v2697_v33 = vrot.slane %v2689_v44, %v3535_v47 }
  0xcd   : > { %2224 = vrot.lane.b32.xlu1 %v4442_v11, %s3321_s17  ;;  %2471 = vrot.lane.b32.xlu0 %v2454_v31, %s3319_s15  ;;  %v625_v6 = vpop.permute.xlu1 %624  ;;  %v2741_v0 = vcombine.low %v2697_v33, %v2729_v37  ;;  %v2742_v62 = vcombine.high %v2697_v33, %v2729_v37 }
  0xce   : > { %v878_v28 = vpop.permute.xlu0 %877  ;;  %v642_v22 = vsel %vm641_vm6, %v640_v36, %v625_v6 }
  0xcf   : > { %v895_v31 = vsel %vm637_vm4, %v894_v45, %v878_v28  ;;  %v3082_v45 = vld [vmem:[%s4402_s4 + $0x18] sm:$0xff] }
  0xd1   : > { %2750 = vrot.lane.b32.xlu1 %v2739_v4, %s3317_s13  ;;  %2228 = vrot.lane.b32.xlu0 %v2202_v35, %s3323_s18  ;;  %v882_v56 = vpop.permute.xlu1 %881  ;;  %s3095_s13 = sshll.u32 %s3303_s24, 7  ;;  %s3241_s24 = scalar_lea.vmem %s3240_s28, 256 }
  0xd2   : > { %v629_v25 = vpop.permute.xlu0 %628  ;;  %v896_v58 = vsel %vm639_vm5, %v895_v31, %v882_v56 }
  0xd3   : > { %v644_v13 = vsel %vm643_vm7, %v642_v22, %v629_v25 }
  0xd4   : > { %3121 = vmatpush3.msra.mxu0 %v644_v13 }
  0xd5   : > { %3123 = vmatmul.mubr.msk.f32.vlgmr.msra.gmra.mxu0 %vm631_vm1, %v645_v39  ;;  %3130 = vmatprep.subr.mxu0 %v3322_v50  ;;  %v1408_v35 = vpop.permute.xlu1 %1407 }
  0xd6   : > { %2475 = vrot.lane.b32.xlu1 %v2455_v32, %s3320_s16  ;;  %2754 = vrot.lane.b32.xlu0 %v2740_v10, %s3318_s14  ;;  %v886_v55 = vpop.permute.xlu0 %885  ;;  %v1434_v16 = vsel %vm631_vm1, %v1398_v9, %v1408_v35  ;;  %s396_s14 = scalar_lea.vmem [#allocation3], %s3068_s12 }
  0xd7   : > { %3132 = vmatprep.mubr.msk.f32.mxu0 %vm3324_vm0, %v3322_v50  ;;  %v897_v40 = vsel %vm641_vm6, %v896_v58, %v886_v55 }
  0xd9   : > { %v890_v32 = vpop.permute.xlu1 %889 }
  0xda   : > { %2479 = vrot.lane.b32.xlu1 %v2456_v59, %s3321_s17  ;;  %2758 = vrot.lane.b32.xlu0 %v2741_v0, %s3319_s15  ;;  %v1412_v27 = vpop.permute.xlu0 %1411  ;;  %v898_v38 = vsel %vm643_vm7, %v897_v40, %v890_v32  ;;  %v2704_v59 = vrot.slane %v2690_v18, %v3535_v47  ;;  %v2862_v47 = vld [vmem:[%s4403_s5] sm:$0xff]  ;;  %v3080_v32 = vld [vmem:[%s4402_s4 + $0x10] sm:$0xff]  ;;  %s2885_s15 = sshll.u32 %s396_s14, 4  ;;  %s2886_s15 = int_to_ptr.vmem [resolvable:$true] %s2885_s15 }
  0xdb   : > { %3126 = vmatpush3.msra.mxu1 %v898_v38  ;;  %v1435_v9 = vsel %vm633_vm2, %v1434_v16, %v1412_v27  ;;  %v3084_v16 = vld [vmem:[%s4402_s4 + $0x20] sm:$0xff]  ;;  %s3235_s20 = scalar_lea.vmem %s2886_s15, 128  ;;  %p3242_p1 = scmp.lt.s32.totalorder %s2886_s15, %s3240_s28 }
  0xdc   : > { %3135 = vmatprep.subr.mxu1 %v3322_v50  ;;  %3128 = vmatmul.mubr.msk.f32.vlgmr.msra.gmra.mxu1 %vm631_vm1, %v3078_v2  ;;  %v2743_v48 = vcombine.low %v2704_v59, %v2736_v53  ;;  %v2744_v57 = vcombine.high %v2704_v59, %v2736_v53  ;;  %p3236_p12 = scmp.ne.s32.totalorder %s2886_s15, %s3235_s20  ;;  %p3243_p2 = scmp.lt.s32.totalorder %s3241_s24, %s3235_s20 }
  0xdd   : > { %v1416_v61 = vpop.permute.xlu1 %1415  ;;  %3137 = vmatprep.mubr.msk.f32.mxu1 %vm3324_vm0, %v3322_v50 }
  0xde   : > { %2483 = vrot.lane.b32.xlu1 %v2457_v21, %s3323_s18  ;;  %2762 = vrot.lane.b32.xlu0 %v2742_v62, %s3320_s16  ;;  %v1663_v51 = vpop.permute.xlu0 %1662  ;;  %v1436_v3 = vsel %vm635_vm3, %v1435_v9, %v1416_v61  ;;  %p3237_p13 = pnand %p3236_p12, %p3402_p4  ;;  %p3244_p3 = por %p3243_p2, %p3242_p1 }
  0xdf   : > { %v1689_v13 = vsel %vm631_vm1, %v1653_v46, %v1663_v51 }
  0xe0   : > { %p3238_p0 = pneg %p3237_p13 }
  0xe1   : > { %v1667_v12 = vpop.permute.xlu1 %1666 }
  0xe2   : > { %2766 = vrot.lane.b32.xlu1 %v2743_v48, %s3321_s17  ;;  %2770 = vrot.lane.b32.xlu0 %v2744_v57, %s3323_s18  ;;  %v1420_v17 = vpop.permute.xlu0 %1419  ;;  %v1690_v10 = vsel %vm633_vm2, %v1689_v13, %v1667_v12  ;;  %v4443_v13 = vcombine.low %v4024_v34, %v4027_v43  ;;  %s2883_s18 = scalar_lea.hbm %s4404_s6, %s3095_s13  ;;  %p3245_p5 = pnand %p3244_p3, %p3238_p0 }
  0xe3   : > { %v1437_v21 = vsel %vm637_vm4, %v1436_v3, %v1420_v17 }
  0xe5   : > { %v1424_v30 = vpop.permute.xlu1 %1423 }
  0xe6   : > { %v1671_v36 = vpop.permute.xlu0 %1670  ;;  %2865 = vperm.xlu1 %3233, %v2862_v47   ;;  %v1438_v19 = vsel %vm639_vm5, %v1437_v21, %v1424_v30 }
  0xe7   : > { %v1691_v55 = vsel %vm635_vm3, %v1690_v10, %v1671_v36 }
  0xe9   : > { %v1675_v11 = vpop.permute.xlu1 %1674 }
  0xea   : > { %v1428_v7 = vpop.permute.xlu0 %1427  ;;  %v1692_v49 = vsel %vm637_vm4, %v1691_v55, %v1675_v11 }
  0xeb   : > { %v1439_v28 = vsel %vm641_vm6, %v1438_v19, %v1428_v7 }
  0xed   : > { %v1432_v6 = vpop.permute.xlu1 %1431 }
  0xee   : > { %v1440_v52 = vsel %vm643_vm7, %v1439_v28, %v1432_v6  ;;  %v1679_v4 = vpop.permute.xlu0 %1678 }
  0xef   : > { %3136 = vmatpush3.msra.mxu1 %v1440_v52  ;;  %v1693_v20 = vsel %vm639_vm5, %v1692_v49, %v1679_v4 }
  0xf0   : > { %3145 = vmatprep.subr.mxu1 %v3322_v50  ;;  %3138 = vmatmul.mubr.msk.f32.vlgmr.msra.gmra.mxu1 %vm631_vm1, %v3082_v45 }
  0xf1   : > { %3147 = vmatprep.mubr.msk.f32.mxu1 %vm3324_vm0, %v3322_v50  ;;  %v1683_v44 = vpop.permute.xlu1 %1682 }
  0xf2   : > { %v2205_v22 = vpop.permute.xlu0 %2204  ;;  %v1694_v5 = vsel %vm641_vm6, %v1693_v20, %v1683_v44  ;;  %v3088_v44 = vld [vmem:[%s4402_s4 + $0x30] sm:$0xff] }
  0xf5   : > { %v2209_v31 = vpop.permute.xlu1 %2208 }
  0xf6   : > { %v1687_v25 = vpop.permute.xlu0 %1686 }
  0xf7   : > { %v1695_v38 = vsel %vm643_vm7, %v1694_v5, %v1687_v25 }
  0xf9   : > { %v4258_v56 = vpop.permute.xlu1 %2459 }
  0xfa   : > { %v2213_v39 = vpop.permute.xlu0 %2212  ;;  %v2486_v10 = vsel %vm631_vm1, %v4443_v13, %v4258_v56  ;;  %v3090_v56 = vld [vmem:[%s4402_s4 + $0x38] sm:$0xff] }
 0x117   : > { %v1157_v37 = vpop.permute.xlu1 %1156  ;;  %v1153_v58 = vpop.permute.xlu0 %1152 }
 0x118   : > { %v1179_v33 = vsel %vm631_vm1, %v1143_v14, %v1153_v58 }
 0x119   : > { %v1180_v24 = vsel %vm633_vm2, %v1179_v33, %v1157_v37 }
 0x11b   : > { %v1165_v35 = vpop.permute.xlu1 %1164  ;;  %v1161_v0 = vpop.permute.xlu0 %1160 }
 0x11c   : > { %v1181_v40 = vsel %vm635_vm3, %v1180_v24, %v1161_v0 }
 0x11d   : > { %v1182_v8 = vsel %vm637_vm4, %v1181_v40, %v1165_v35 }
 0x11f   : > { %v1169_v46 = vpop.permute.xlu0 %1168  ;;  %v1173_v18 = vpop.permute.xlu1 %1172 }
 0x120   : > { %v1183_v1 = vsel %vm639_vm5, %v1182_v8, %v1169_v46 }
 0x121   : > { %v1184_v14 = vsel %vm641_vm6, %v1183_v1, %v1173_v18  ;;  %v3092_v18 = vld [vmem:[%s4402_s4 + $0x40] sm:$0xff] }
 0x123   : > { %v1177_v27 = vpop.permute.xlu0 %1176 }
 0x124   : > { %v1185_v2 = vsel %vm643_vm7, %v1184_v14, %v1177_v27  ;;  %v458_v14 = vld [vmem:[#allocation2] sm:$0xff] }
 0x125   : > { %3131 = vmatpush3.msra.mxu0 %v1185_v2 }
 0x126   : > { %3140 = vmatprep.subr.mxu0 %v3322_v50  ;;  %3133 = vmatmul.mubr.msk.f32.vlgmr.msra.gmra.mxu0 %vm631_vm1, %v3080_v32 }
 0x127   : > { %v1950_v62 = vpop.permute.xlu1 %1949  ;;  %v1954_v53 = vpop.permute.xlu0 %1953  ;;  %3141 = vmatpush3.msra.mxu0 %v1695_v38  ;;  %3142 = vmatprep.mubr.msk.f32.mxu0 %vm3324_vm0, %v3322_v50 }
 0x128   : > { %3150 = vmatprep.subr.mxu0 %v3322_v50  ;;  %v1976_v61 = vsel %vm631_vm1, %v1940_v42, %v1950_v62  ;;  %v2231_v42 = vsel %vm631_vm1, %v2195_v41, %v2205_v22 }
 0x129   : > { %v1977_v48 = vsel %vm633_vm2, %v1976_v61, %v1954_v53  ;;  %v2232_v28 = vsel %vm633_vm2, %v2231_v42, %v2209_v31 }
 0x12a   : > { %3143 = vmatmul.mubr.msk.f32.vlgmr.msra.gmra.mxu0 %vm631_vm1, %v3084_v16  ;;  %v2233_v52 = vsel %vm635_vm3, %v2232_v28, %v2213_v39 }
 0x12b   : > { %v1958_v59 = vpop.permute.xlu1 %1957  ;;  %v1962_v51 = vpop.permute.xlu0 %1961  ;;  %3152 = vmatprep.mubr.msk.f32.mxu0 %vm3324_vm0, %v3322_v50 }
 0x12c   : > { %v1978_v17 = vsel %vm635_vm3, %v1977_v48, %v1958_v59 }
 0x12d   : > { %v1979_v12 = vsel %vm637_vm4, %v1978_v17, %v1962_v51 }
 0x12f   : > { %v1966_v57 = vpop.permute.xlu1 %1965  ;;  %v1970_v9 = vpop.permute.xlu0 %1969 }
 0x130   : > { %v1980_v21 = vsel %vm639_vm5, %v1979_v12, %v1966_v57 }
 0x131   : > { %v1981_v36 = vsel %vm641_vm6, %v1980_v21, %v1970_v9 }
 0x133   : > { %v2217_v3 = vpop.permute.xlu1 %2216  ;;  %v2464_v47 = vpop.permute.xlu0 %2463 }
 0x134   : > { %v2234_v4 = vsel %vm637_vm4, %v2233_v52, %v2217_v3  ;;  %v2487_v37 = vsel %vm633_vm2, %v2486_v10, %v2464_v47 }
 0x137   : > { %v1974_v30 = vpop.permute.xlu1 %1973  ;;  %v2221_v19 = vpop.permute.xlu0 %2220 }
 0x138   : > { %v1982_v54 = vsel %vm643_vm7, %v1981_v36, %v1974_v30  ;;  %v2235_v60 = vsel %vm639_vm5, %v2234_v4, %v2221_v19 }
 0x139   : > { %3146 = vmatpush3.msra.mxu1 %v1982_v54 }
 0x13a   : > { %3155 = vmatprep.subr.mxu1 %v3322_v50  ;;  %3148 = vmatmul.mubr.msk.f32.vlgmr.msra.gmra.mxu1 %vm631_vm1, %v3086_v26 }
 0x13b   : > { %v2468_v11 = vpop.permute.xlu1 %2467  ;;  %v2747_v7 = vpop.permute.xlu0 %2746  ;;  %3157 = vmatprep.mubr.msk.f32.mxu1 %vm3324_vm0, %v3322_v50 }
 0x13c   : > { %v2488_v55 = vsel %vm635_vm3, %v2487_v37, %v2468_v11 }
 0x13f   : > { %v2225_v6 = vpop.permute.xlu1 %2224  ;;  %v2472_v45 = vpop.permute.xlu0 %2471 }
 0x140   : > { %v2236_v23 = vsel %vm641_vm6, %v2235_v60, %v2225_v6  ;;  %v2489_v35 = vsel %vm637_vm4, %v2488_v55, %v2472_v45 }
 0x143   : > { %v2751_v41 = vpop.permute.xlu1 %2750  ;;  %v2229_v22 = vpop.permute.xlu0 %2228 }
 0x144   : > { %v2237_v25 = vsel %vm643_vm7, %v2236_v23, %v2229_v22 }
 0x145   : > { %3151 = vmatpush3.msra.mxu0 %v2237_v25 }
 0x146   : > { %3153 = vmatmul.mubr.msk.f32.vlgmr.msra.gmra.mxu0 %vm631_vm1, %v3088_v44  ;;  %3160 = vmatprep.subr.mxu0 %v3322_v50 }
 0x147   : > { %3162 = vmatprep.mubr.msk.f32.mxu0 %vm3324_vm0, %v3322_v50  ;;  %v2773_v50 = vsel %vm631_vm1, %v2737_v15, %v2747_v7 }
 0x148   : > { %v2476_v31 = vpop.permute.xlu1 %2475  ;;  %v2755_v39 = vpop.permute.xlu0 %2754  ;;  %v2774_v40 = vsel %vm633_vm2, %v2773_v50, %v2751_v41 }
 0x149   : > { %v2490_v24 = vsel %vm639_vm5, %v2489_v35, %v2476_v31  ;;  %v2775_v8 = vsel %vm635_vm3, %v2774_v40, %v2755_v39 }
 0x14c   : > { %v2480_v58 = vpop.permute.xlu1 %2479  ;;  %v2759_v33 = vpop.permute.xlu0 %2758 }
 0x14d   : > { %v2491_v0 = vsel %vm641_vm6, %v2490_v24, %v2480_v58  ;;  %v2776_v46 = vsel %vm637_vm4, %v2775_v8, %v2759_v33 }
 0x150   : > { %v2484_v34 = vpop.permute.xlu1 %2483  ;;  %v2763_v43 = vpop.permute.xlu0 %2762 }
 0x151   : > { %v2492_v49 = vsel %vm643_vm7, %v2491_v0, %v2484_v34  ;;  %v2777_v63 = vsel %vm639_vm5, %v2776_v46, %v2763_v43 }
 0x152   : > { %3156 = vmatpush3.msra.mxu1 %v2492_v49 }
 0x153   : > { %3158 = vmatmul.mubr.msk.f32.vlgmr.msra.gmra.mxu1 %vm631_vm1, %v3090_v56 }
 0x154   : > { %v2767_v29 = vpop.permute.xlu1 %2766  ;;  %v2771_v15 = vpop.permute.xlu0 %2770 }
 0x155   : > { %v2778_v20 = vsel %vm641_vm6, %v2777_v63, %v2767_v29 }
 0x156   : > { %v2779_v1 = vsel %vm643_vm7, %v2778_v20, %v2771_v15 }
 0x157   : > { %3161 = vmatpush3.msra.mxu0 %v2779_v1 }
 0x158   : > { %3163 = vmatmul.mubr.msk.f32.vlgmr.msra.gmra.mxu0 %vm631_vm1, %v3092_v18 }
 0x161   : > { %v2866_v28 = vpop.permute.xlu1 %2865 }
 0x195   : > { %v715_v5 = vpop.f32.mrf.mxu0 }
 0x196   : > { %v719_v32 = vadd.f32 %v715_v5, %v458_v14 }
 0x197   : > { %v3124_v27 = vpop.f32.mrf.mxu0 }
 0x19c   : > { %v970_v2 = vpop.f32.mrf.mxu1 }
 0x19d   : > { %v974_v38 = vadd.f32 %v970_v2, %v719_v32 }
 0x19e   : > { %v3129_v62 = vpop.f32.mrf.mxu1 }
 0x1b0   : > { %v1512_v53 = vpop.f32.mrf.mxu1 }
 0x1b2   : > { %v3139_v16 = vpop.f32.mrf.mxu1 }
 0x1e6   : > { %v1257_v59 = vpop.f32.mrf.mxu0 }
 0x1e7   : > { %v1261_v51 = vadd.f32 %v1257_v59, %v974_v38 }
 0x1e8   : > { %v3134_v61 = vpop.f32.mrf.mxu0 }
 0x1e9   : > { %v1516_v48 = vadd.f32 %v1512_v53, %v1261_v51 }
 0x1ea   : > { %v1767_v57 = vpop.f32.mrf.mxu0 }
 0x1eb   : > { %v1771_v47 = vadd.f32 %v1767_v57, %v1516_v48 }
 0x1ec   : > { %v3144_v9 = vpop.f32.mrf.mxu0 }
 0x1fa   : > { %v2054_v17 = vpop.f32.mrf.mxu1 }
 0x1fb   : > { %v2058_v36 = vadd.f32 %v2054_v17, %v1771_v47 }
 0x1fc   : > { %v3149_v12 = vpop.f32.mrf.mxu1 }
 0x206   : > { %v2309_v3 = vpop.f32.mrf.mxu0 }
 0x207   : > { %v2313_v30 = vadd.f32 %v2309_v3, %v2058_v36 }
 0x208   : > { %v3154_v21 = vpop.f32.mrf.mxu0 }
 0x213   : > { %v2564_v19 = vpop.f32.mrf.mxu1 }
 0x214   : > { %v2568_v26 = vadd.f32 %v2564_v19, %v2313_v30 }
 0x215   : > { %v3159_v54 = vpop.f32.mrf.mxu1 }
 0x218   : > { %v2851_v42 = vpop.f32.mrf.mxu0 }
 0x219   : > { %v2855_v11 = vadd.f32 %v2851_v42, %v2568_v26 }
 0x21a   : > { %v3164_v7 = vpop.f32.mrf.mxu0 }
 0x21b   : > { %2857 = vst.msk [vmem:[#allocation2] sm:$0xff] %vm456_vm8, %v2855_v11 }
 0x222   : > { %v2861_v6 = vld [vmem:[#allocation2] sm:$0xff] }
 0x223   : > { %v2868_v45 = vadd.f32 %v2866_v28, %v2861_v6 }
 0x225   : > { %2869 = vst.msk [vmem:[%s396_s14] sm:$0xff] %vm456_vm8, %v2868_v45 }
 0x226   : > { %3248 = shalt.err (!%p3245_p5)
}
 0x227   : > { %s3249_s30 = scalar_lea.hbm %s2883_s18, 128  ;;  %s3253_s12 = scalar_lea.hbm %s4404_s6, 256 }
 0x228   : > { %p3250_p6 = scmp.ne.s32.totalorder %s2883_s18, %s3249_s30  ;;  %p3254_p10 = scmp.lt.s32.totalorder %s2883_s18, %s4404_s6 }
 0x229   : > { %p3255_p11 = scmp.lt.s32.totalorder %s3253_s12, %s3249_s30 }
 0x22a   : > { %p3251_p7 = pnand %p3250_p6, %p3402_p4 }
 0x22b   : > { %p3256_p12 = por %p3255_p11, %p3254_p10 }
 0x22c   : > { %p3252_p9 = pneg %p3251_p7 }
 0x22e   : > { %p3257_p13 = pnand %p3256_p12, %p3252_p9 }
 0x230   : > { %3260 = shalt.err (!%p3257_p13)
}
 0x231   : > { %3165 = dma.vmem_to_hbm [thread:$0]  (%p3402_p4), %s2886_s15, 128, %s2883_s18, %s2871_s19  }
 0x232 PF: > { %p3171_p0 = scmp.ge.s32.totalorder %s3311_s26, 2  ;;  %s2897_s16 = sand.u32 1, %s3291_s21  }
 0x233   : > { %s2898_s17 = scalar_lea.sflag [#allocation4], %s2897_s16 }
 0x234   : > { %p3168_p1 = pnand %p3171_p0, %p3409_p8 }
 0x236   : > { %p3169_p2 = pneg %p3168_p1 }
 0x238   : > { %3286 = dma.done.wait (%p3169_p2), %s2898_s17, 128  }
 0x239   : > { %3288 = vsyncadd (%p3169_p2), %s2898_s17, 4294967168  ;;  %s19_s26 = sadd.s32 1, %s3311_s26   ;;  %s4444_s21 = smov %s3295_s22 }
 0x23a   : > { %p16_p3 = scmp.ge.s32.totalorder %s19_s26, 4   ;;  %s4445_s22 = smov %s3299_s23 }
 0x23b   : > { %s4446_s23 = smov %s3415_s10  ;;  %s4447_s24 = smov %s3307_s25 }
 0x23c   : > { %s4448_s25 = smov %s4450_s29  ;;  %18 = sbr.rel (!%p16_p3) target bundleno = 4 (0x4), region = 110 }
 0x241   :  { %2903 = vsyncpa [#allocation4], 1 }
 0x242   :  { %2905 = vsyncpa [#allocation4 + $0x1], 1 }

</bundles_post_ra>
